<compile_context>
chip_gen: v6e
topology: v6e:2x2x1
jax: 0.10.0
libtpu: 0.0.40
codegen_flags: <defaults>
</compile_context>

<pallas_src>
import jax
import jax.numpy as jnp
from jax.experimental import pallas as pl
from jax.experimental.pallas import tpu as pltpu

BN_EPS = 1e-5
MXU_DTYPE = jnp.bfloat16          # MXU operand dtype (accumulation is f32)
VMEM_LIMIT = 32 * 1024 * 1024     # explicit scoped-VMEM cap, safe on v5e/v6e/v7x


# ---------------------------------------------------------------------------
# Pass 1: row-decomposed conv at upsampled width.
#   One grid step = TR original rows -> 2*TR upsampled output rows,
#   plus per-channel sum / sum-of-squares accumulation for training-mode BN.
# ---------------------------------------------------------------------------
def conv_rows_kernel(xa_ref, xb_ref, wk_ref, y_ref, stats_ref):
    t = pl.program_id(1)

    # New batch item -> reset this item's resident stats accumulator.
    # NOTE: relies on the row-tile axis being innermost and "arbitrary" with a
    # per-batch-item resident stats block; do not reorder the grid.
    @pl.when(t == 0)
    def _():
        stats_ref[...] = jnp.zeros_like(stats_ref)

    tr = xa_ref.shape[1]
    c_in = xa_ref.shape[2]
    c_out, w2 = y_ref.shape[2], y_ref.shape[3]

    # Padded original rows [t*TR, t*TR + TR + 2) with duplicated (upsampled)
    # columns; rows tr..tr+1 come from the next halo block.
    rows = [xa_ref[0, k] for k in range(tr)] + [xb_ref[0, 0], xb_ref[0, 1]]

    sum_acc = jnp.zeros((c_out, w2), jnp.float32)
    sq_acc = jnp.zeros((c_out, w2), jnp.float32)

    for li in range(tr):                         # static unroll
        for a in range(2):                       # output-row parity
            # Two adjacent source rows merged into the contraction dim:
            # (2*C_in, 2W+2) = original rows {i+a-1, i+a}, i = t*TR + li.
            x2 = jnp.concatenate([rows[li + a], rows[li + a + 1]], axis=0)
            acc = jnp.zeros((c_out, w2), jnp.float32)
            for dx in range(3):                  # column taps at upsampled width
                acc += jnp.dot(wk_ref[a, dx], x2[:, dx:dx + w2],
                               preferred_element_type=jnp.float32)
            # NOTE: conv bias intentionally omitted -- cancelled by
            # training-mode BatchNorm (mean subtraction).
            y_ref[0, 2 * li + a] = acc
            sum_acc += acc                       # f32 per-lane partial sums
            sq_acc += acc * acc

    stats_ref[0, 0] += sum_acc
    stats_ref[0, 1] += sq_acc


# ---------------------------------------------------------------------------
# Pass 2: folded BatchNorm (scale/shift) + ReLU, writing NCHW directly
#         (the final layout transpose is fused here, no extra HBM pass).
# ---------------------------------------------------------------------------
def bn_relu_nchw_kernel(y_ref, scale_ref, shift_ref, out_ref):
    y = jnp.maximum(y_ref[0] * scale_ref[...] + shift_ref[...], 0.0)  # (2TR,C,W2)
    out_ref[0] = jnp.transpose(y, (1, 0, 2))                          # (C,2TR,W2)


def _pick_row_tile(h):
    # Largest of {8,4,2} dividing H (keeps halo logic exercised at demo size).
    # Larger TR (16-64) pays off on v6e's 128 MiB VMEM for realistic shapes;
    # re-derive the VMEM budget for v7x (64 MiB physical / 32 MiB scoped).
    for tr in (8, 4, 2):
        if h % tr == 0:
            return tr
    return h   # odd/prime H: one tile per image (requires H >= 2)


def up_conv(x, params):
    """x: (N, C_in, H, W) float32  ->  (N, C_out, 2H, 2W) float32."""
    N, C_in, H, W = x.shape
    assert H >= 2, "up_conv Pallas kernel assumes H >= 2"
    w = params["w"]                               # (C_out, C_in, 3, 3) OIHW
    gamma, beta = params["gamma"], params["beta"]
    C_out = w.shape[0]
    H2, W2 = 2 * H, 2 * W
    TR = _pick_row_tile(H)
    nT = H // TR
    Wp = W2 + 2

    # ---- input prep at ORIGINAL row resolution ----------------------------
    # channels->sublanes, nearest column duplication (width 2W), 1-col zero
    # pad, then 1 zero row on top and TR-1 zero rows at the bottom so the
    # "t+1" halo block never runs out of bounds.  Stored bf16 for the MXU.
    xt = jnp.transpose(x, (0, 2, 1, 3))                       # (N, H, C_in, W)
    xc = jnp.repeat(xt, 2, axis=3)                            # (N, H, C_in, 2W)
    xc = jnp.pad(xc, ((0, 0), (0, 0), (0, 0), (1, 1)))        # cols -> 2W+2
    xup = jnp.pad(xc, ((0, 0), (1, TR - 1), (0, 0), (0, 0)))  # rows -> H+TR
    xup = xup.astype(MXU_DTYPE)

    # ---- fold the 3x3 kernel into per-row-parity 2-row weights ------------
    # Output row 2i+a of (upsample x2 -> conv3x3) only touches original rows
    # i+a-1 (dr=0) and i+a (dr=1):
    #   a=0: dr0 gets dy=0,      dr1 gets dy=1 + dy=2
    #   a=1: dr0 gets dy=0+dy=1, dr1 gets dy=2
    wk = jnp.transpose(w, (2, 3, 0, 1))                       # (3 dy, 3 dx, C_out, C_in)
    w_a0 = jnp.concatenate([wk[0], wk[1] + wk[2]], axis=-1)   # (3, C_out, 2*C_in)
    w_a1 = jnp.concatenate([wk[0] + wk[1], wk[2]], axis=-1)
    wrow = jnp.stack([w_a0, w_a1], axis=0).astype(MXU_DTYPE)  # (2, 3, C_out, 2*C_in)

    # ---- pass 1: conv rows (2*TR upsampled rows / step) + BN statistics ---
    y, stats = pl.pallas_call(
        conv_rows_kernel,
        grid=(N, nT),
        in_specs=[
            pl.BlockSpec((1, TR, C_in, Wp), lambda n, t: (n, t, 0, 0)),
            pl.BlockSpec((1, TR, C_in, Wp), lambda n, t: (n, t + 1, 0, 0)),
            pl.BlockSpec((2, 3, C_out, 2 * C_in), lambda n, t: (0, 0, 0, 0)),
        ],
        out_specs=[
            pl.BlockSpec((1, 2 * TR, C_out, W2), lambda n, t: (n, t, 0, 0)),
            pl.BlockSpec((1, 2, C_out, W2), lambda n, t: (n, 0, 0, 0)),
        ],
        out_shape=[
            jax.ShapeDtypeStruct((N, H2, C_out, W2), jnp.float32),
            jax.ShapeDtypeStruct((N, 2, C_out, W2), jnp.float32),
        ],
        compiler_params=pltpu.CompilerParams(
            dimension_semantics=("parallel", "arbitrary"),
            vmem_limit_bytes=VMEM_LIMIT),
    )(xup, xup, wrow)

    # ---- fold training-mode BN stats into one scale/shift per channel -----
    # Single-pass E[y^2] - mean^2 in f32; adequate at these magnitudes.
    pix = N * H2 * W2
    ch_sum = jnp.sum(stats[:, 0], axis=(0, 2))                # (C_out,)
    ch_sumsq = jnp.sum(stats[:, 1], axis=(0, 2))              # (C_out,)
    mean = ch_sum / pix
    var = jnp.maximum(ch_sumsq / pix - mean * mean, 0.0)      # biased (training)
    scale = (gamma * jax.lax.rsqrt(var + BN_EPS)).astype(jnp.float32)
    shift = (beta - mean * scale).astype(jnp.float32)
    scale = scale.reshape(C_out, 1)
    shift = shift.reshape(C_out, 1)

    # ---- pass 2: folded BN + ReLU, NCHW output (transpose fused) ----------
    # NOTE: store lane width is W2 (fixed by output semantics); it is
    # lane-dense (>=128) for realistic UNet widths, masked only at toy sizes.
    out = pl.pallas_call(
        bn_relu_nchw_kernel,
        grid=(N, nT),
        in_specs=[
            pl.BlockSpec((1, 2 * TR, C_out, W2), lambda n, t: (n, t, 0, 0)),
            pl.BlockSpec((C_out, 1), lambda n, t: (0, 0)),
            pl.BlockSpec((C_out, 1), lambda n, t: (0, 0)),
        ],
        out_specs=pl.BlockSpec((1, C_out, 2 * TR, W2), lambda n, t: (n, 0, t, 0)),
        out_shape=jax.ShapeDtypeStruct((N, C_out, H2, W2), jnp.float32),
        compiler_params=pltpu.CompilerParams(
            dimension_semantics=("parallel", "parallel"),
            vmem_limit_bytes=VMEM_LIMIT),
    )(y, scale, shift)
    return out


# ---------------------------------------------------------------------------
# Parameters + pure-JAX reference of the PyTorch forward (training-mode BN).
# ---------------------------------------------------------------------------
def make_params(key, ch_in, ch_out):
    k1, k2 = jax.random.split(key)
    f32 = jnp.float32
    return {
        "w": jax.random.normal(k1, (ch_out, ch_in, 3, 3), f32) * 0.1,
        # Conv bias exists in the module; it cancels under training-mode BN,
        # so the kernel never reads it (the reference keeps it to prove this).
        "b": jax.random.normal(k2, (ch_out,), f32) * 0.1,
        "gamma": jnp.ones((ch_out,), f32),    # BatchNorm2d default init
        "beta": jnp.zeros((ch_out,), f32),
    }


def reference_forward(x, params):
    w, b = params["w"], params["b"]
    gamma, beta = params["gamma"], params["beta"]
    u = jnp.repeat(jnp.repeat(x, 2, axis=2), 2, axis=3)       # nearest 2x
    y = jax.lax.conv_general_dilated(
        u, w, window_strides=(1, 1), padding=((1, 1), (1, 1)),
        dimension_numbers=("NCHW", "OIHW", "NCHW"))
    y = y + b.reshape(1, -1, 1, 1)
    mean = jnp.mean(y, axis=(0, 2, 3), keepdims=True)
    var = jnp.mean((y - mean) ** 2, axis=(0, 2, 3), keepdims=True)
    y = (y - mean) * jax.lax.rsqrt(var + BN_EPS)
    y = y * gamma.reshape(1, -1, 1, 1) + beta.reshape(1, -1, 1, 1)
    return jnp.maximum(y, 0.0)


if __name__ == "__main__":
    key = jax.random.PRNGKey(0)
    kx, kp = jax.random.split(key)

    N, ch_in, ch_out, H, W = 2, 4, 8, 16, 16
    x = jax.random.normal(kx, (N, ch_in, H, W), jnp.float32)
    params = make_params(kp, ch_in, ch_out)

    up_conv_jit = jax.jit(up_conv)
    out = jax.block_until_ready(up_conv_jit(x, params))
    ref = jax.block_until_ready(reference_forward(x, params))

    assert out.shape == (N, ch_out, 2 * H, 2 * W)
    err = float(jnp.max(jnp.abs(out - ref)))
    # Tolerance reflects bf16 MXU operands (f32 accumulation) vs an f32
    # reference; with MXU_DTYPE = float32 the kernel matches to ~1e-5.
    tol = 5e-2 if MXU_DTYPE == jnp.bfloat16 else 1e-4
    assert err <= tol, f"max abs err {err} > tol {tol}"

    print("KERNEL_OK")
</pallas_src>

<mosaic_0001>
module attributes {stable_mosaic.version = 11 : i64} {
  func.func @conv_rows_kernel(%arg0: i32, %arg1: i32, %arg2: memref<1x8x4x34xbf16, #tpu.memory_space<vmem>>, %arg3: memref<1x8x4x34xbf16, #tpu.memory_space<vmem>>, %arg4: memref<2x3x8x8xbf16, #tpu.memory_space<vmem>>, %arg5: memref<1x16x8x32xf32, #tpu.memory_space<vmem>>, %arg6: memref<1x2x8x32xf32, #tpu.memory_space<vmem>>) attributes {dimension_semantics = [#tpu.dimension_semantics<parallel>, #tpu.dimension_semantics<arbitrary>], iteration_bounds = array<i64: 2, 2>, scalar_prefetch = 0 : i64, scratch_operands = 0 : i64, tpu.core_type = #tpu.core_type<tc>, window_params = [{transform_indices = @transform_0, window_bounds = array<i64: 1, 8, 4, 34>}, {transform_indices = @transform_1, window_bounds = array<i64: 1, 8, 4, 34>}, {pipeline_mode = #tpu.pipeline_mode<synchronous>, transform_indices = @transform_2, window_bounds = array<i64: 2, 3, 8, 8>}, {transform_indices = @transform_3, window_bounds = array<i64: 1, 16, 8, 32>}, {transform_indices = @transform_4, window_bounds = array<i64: 1, 2, 8, 32>}]} {
    %c0_i32 = arith.constant 0 : i32
    %0 = arith.cmpi eq, %arg1, %c0_i32 : i32
    %1 = arith.extui %0 : i1 to i32
    %c0_i32_0 = arith.constant 0 : i32
    %2 = arith.cmpi ne, %1, %c0_i32_0 : i32
    scf.if %2 {
      %cst_362 = arith.constant 0.000000e+00 : f32
      %405 = vector.broadcast %cst_362 : f32 to vector<1x2x8x32xf32>
      %c0_363 = arith.constant 0 : index
      %c0_364 = arith.constant 0 : index
      %c0_365 = arith.constant 0 : index
      %c0_366 = arith.constant 0 : index
      %406 = vector.load %arg6[%c0_363, %c0_364, %c0_365, %c0_366] : memref<1x2x8x32xf32, #tpu.memory_space<vmem>>, vector<1x2x8x32xf32>
      tpu.vector_store %arg6[%c0_363, %c0_364, %c0_365, %c0_366], %405 {strides = array<i32>} : memref<1x2x8x32xf32, #tpu.memory_space<vmem>>, vector<1x2x8x32xf32>,
    } else {
    }
    %c0 = arith.constant 0 : index
    %c0_1 = arith.constant 0 : index
    %c0_2 = arith.constant 0 : index
    %c0_3 = arith.constant 0 : index
    %3 = vector.load %arg2[%c0, %c0_1, %c0_2, %c0_3] : memref<1x8x4x34xbf16, #tpu.memory_space<vmem>>, vector<1x1x4x34xbf16>
    %4 = vector.shape_cast %3 : vector<1x1x4x34xbf16> to vector<4x34xbf16>
    %c0_4 = arith.constant 0 : index
    %c1 = arith.constant 1 : index
    %c0_5 = arith.constant 0 : index
    %c0_6 = arith.constant 0 : index
    %5 = vector.load %arg2[%c0_4, %c1, %c0_5, %c0_6] : memref<1x8x4x34xbf16, #tpu.memory_space<vmem>>, vector<1x1x4x34xbf16>
    %6 = vector.shape_cast %5 : vector<1x1x4x34xbf16> to vector<4x34xbf16>
    %c0_7 = arith.constant 0 : index
    %c2 = arith.constant 2 : index
    %c0_8 = arith.constant 0 : index
    %c0_9 = arith.constant 0 : index
    %7 = vector.load %arg2[%c0_7, %c2, %c0_8, %c0_9] : memref<1x8x4x34xbf16, #tpu.memory_space<vmem>>, vector<1x1x4x34xbf16>
    %8 = vector.shape_cast %7 : vector<1x1x4x34xbf16> to vector<4x34xbf16>
    %c0_10 = arith.constant 0 : index
    %c3 = arith.constant 3 : index
    %c0_11 = arith.constant 0 : index
    %c0_12 = arith.constant 0 : index
    %9 = vector.load %arg2[%c0_10, %c3, %c0_11, %c0_12] : memref<1x8x4x34xbf16, #tpu.memory_space<vmem>>, vector<1x1x4x34xbf16>
    %10 = vector.shape_cast %9 : vector<1x1x4x34xbf16> to vector<4x34xbf16>
    %c0_13 = arith.constant 0 : index
    %c4 = arith.constant 4 : index
    %c0_14 = arith.constant 0 : index
    %c0_15 = arith.constant 0 : index
    %11 = vector.load %arg2[%c0_13, %c4, %c0_14, %c0_15] : memref<1x8x4x34xbf16, #tpu.memory_space<vmem>>, vector<1x1x4x34xbf16>
    %12 = vector.shape_cast %11 : vector<1x1x4x34xbf16> to vector<4x34xbf16>
    %c0_16 = arith.constant 0 : index
    %c5 = arith.constant 5 : index
    %c0_17 = arith.constant 0 : index
    %c0_18 = arith.constant 0 : index
    %13 = vector.load %arg2[%c0_16, %c5, %c0_17, %c0_18] : memref<1x8x4x34xbf16, #tpu.memory_space<vmem>>, vector<1x1x4x34xbf16>
    %14 = vector.shape_cast %13 : vector<1x1x4x34xbf16> to vector<4x34xbf16>
    %c0_19 = arith.constant 0 : index
    %c6 = arith.constant 6 : index
    %c0_20 = arith.constant 0 : index
    %c0_21 = arith.constant 0 : index
    %15 = vector.load %arg2[%c0_19, %c6, %c0_20, %c0_21] : memref<1x8x4x34xbf16, #tpu.memory_space<vmem>>, vector<1x1x4x34xbf16>
    %16 = vector.shape_cast %15 : vector<1x1x4x34xbf16> to vector<4x34xbf16>
    %c0_22 = arith.constant 0 : index
    %c7 = arith.constant 7 : index
    %c0_23 = arith.constant 0 : index
    %c0_24 = arith.constant 0 : index
    %17 = vector.load %arg2[%c0_22, %c7, %c0_23, %c0_24] : memref<1x8x4x34xbf16, #tpu.memory_space<vmem>>, vector<1x1x4x34xbf16>
    %18 = vector.shape_cast %17 : vector<1x1x4x34xbf16> to vector<4x34xbf16>
    %c0_25 = arith.constant 0 : index
    %c0_26 = arith.constant 0 : index
    %c0_27 = arith.constant 0 : index
    %c0_28 = arith.constant 0 : index
    %19 = vector.load %arg3[%c0_25, %c0_26, %c0_27, %c0_28] : memref<1x8x4x34xbf16, #tpu.memory_space<vmem>>, vector<1x1x4x34xbf16>
    %20 = vector.shape_cast %19 : vector<1x1x4x34xbf16> to vector<4x34xbf16>
    %c0_29 = arith.constant 0 : index
    %c1_30 = arith.constant 1 : index
    %c0_31 = arith.constant 0 : index
    %c0_32 = arith.constant 0 : index
    %21 = vector.load %arg3[%c0_29, %c1_30, %c0_31, %c0_32] : memref<1x8x4x34xbf16, #tpu.memory_space<vmem>>, vector<1x1x4x34xbf16>
    %22 = vector.shape_cast %21 : vector<1x1x4x34xbf16> to vector<4x34xbf16>
    %cst = arith.constant 0.000000e+00 : f32
    %23 = vector.broadcast %cst : f32 to vector<8x32xf32>
    %cst_33 = arith.constant 0.000000e+00 : f32
    %24 = vector.broadcast %cst_33 : f32 to vector<8x32xf32>
    %25 = tpu.concatenate %4, %6 in 0 : vector<4x34xbf16>, vector<4x34xbf16> -> vector<8x34xbf16>
    %cst_34 = arith.constant 0.000000e+00 : f32
    %26 = vector.broadcast %cst_34 : f32 to vector<8x32xf32>
    %c0_35 = arith.constant 0 : index
    %c0_36 = arith.constant 0 : index
    %c0_37 = arith.constant 0 : index
    %c0_38 = arith.constant 0 : index
    %27 = vector.load %arg4[%c0_35, %c0_36, %c0_37, %c0_38] : memref<2x3x8x8xbf16, #tpu.memory_space<vmem>>, vector<1x1x8x8xbf16>
    %28 = vector.shape_cast %27 : vector<1x1x8x8xbf16> to vector<8x8xbf16>
    %29 = vector.extract_strided_slice %25 {offsets = [0, 0], sizes = [8, 32], strides = [1, 1]} : vector<8x34xbf16> to vector<8x32xbf16>
    %cst_39 = arith.constant dense<0.000000e+00> : vector<8x32xf32>
    %30 = tpu.matmul %28, %29, %cst_39 {dimension_numbers = #tpu.dot_dimension_numbers<[1], [0], [0], [1], [0, 0, 1, 1], [], []>} : vector<8x8xbf16>, vector<8x32xbf16>, vector<8x32xf32> -> vector<8x32xf32>
    %31 = arith.addf %26, %30 : vector<8x32xf32>
    %c0_40 = arith.constant 0 : index
    %c1_41 = arith.constant 1 : index
    %c0_42 = arith.constant 0 : index
    %c0_43 = arith.constant 0 : index
    %32 = vector.load %arg4[%c0_40, %c1_41, %c0_42, %c0_43] : memref<2x3x8x8xbf16, #tpu.memory_space<vmem>>, vector<1x1x8x8xbf16>
    %33 = vector.shape_cast %32 : vector<1x1x8x8xbf16> to vector<8x8xbf16>
    %34 = vector.extract_strided_slice %25 {offsets = [0, 1], sizes = [8, 32], strides = [1, 1]} : vector<8x34xbf16> to vector<8x32xbf16>
    %cst_44 = arith.constant dense<0.000000e+00> : vector<8x32xf32>
    %35 = tpu.matmul %33, %34, %cst_44 {dimension_numbers = #tpu.dot_dimension_numbers<[1], [0], [0], [1], [0, 0, 1, 1], [], []>} : vector<8x8xbf16>, vector<8x32xbf16>, vector<8x32xf32> -> vector<8x32xf32>
    %36 = arith.addf %31, %35 : vector<8x32xf32>
    %c0_45 = arith.constant 0 : index
    %c2_46 = arith.constant 2 : index
    %c0_47 = arith.constant 0 : index
    %c0_48 = arith.constant 0 : index
    %37 = vector.load %arg4[%c0_45, %c2_46, %c0_47, %c0_48] : memref<2x3x8x8xbf16, #tpu.memory_space<vmem>>, vector<1x1x8x8xbf16>
    %38 = vector.shape_cast %37 : vector<1x1x8x8xbf16> to vector<8x8xbf16>
    %39 = vector.extract_strided_slice %25 {offsets = [0, 2], sizes = [8, 32], strides = [1, 1]} : vector<8x34xbf16> to vector<8x32xbf16>
    %cst_49 = arith.constant dense<0.000000e+00> : vector<8x32xf32>
    %40 = tpu.matmul %38, %39, %cst_49 {dimension_numbers = #tpu.dot_dimension_numbers<[1], [0], [0], [1], [0, 0, 1, 1], [], []>} : vector<8x8xbf16>, vector<8x32xbf16>, vector<8x32xf32> -> vector<8x32xf32>
    %41 = arith.addf %36, %40 : vector<8x32xf32>
    %c0_50 = arith.constant 0 : index
    %c0_51 = arith.constant 0 : index
    %c0_52 = arith.constant 0 : index
    %c0_53 = arith.constant 0 : index
    %42 = vector.load %arg5[%c0_50, %c0_51, %c0_52, %c0_53] : memref<1x16x8x32xf32, #tpu.memory_space<vmem>>, vector<1x1x8x32xf32>
    %43 = vector.shape_cast %42 : vector<1x1x8x32xf32> to vector<8x32xf32>
    %44 = vector.shape_cast %41 : vector<8x32xf32> to vector<1x1x8x32xf32>
    tpu.vector_store %arg5[%c0_50, %c0_51, %c0_52, %c0_53], %44 {strides = array<i32>} : memref<1x16x8x32xf32, #tpu.memory_space<vmem>>, vector<1x1x8x32xf32>,
    %45 = arith.addf %23, %41 : vector<8x32xf32>
    %46 = arith.mulf %41, %41 : vector<8x32xf32>
    %47 = arith.addf %24, %46 : vector<8x32xf32>
    %48 = tpu.concatenate %6, %8 in 0 : vector<4x34xbf16>, vector<4x34xbf16> -> vector<8x34xbf16>
    %cst_54 = arith.constant 0.000000e+00 : f32
    %49 = vector.broadcast %cst_54 : f32 to vector<8x32xf32>
    %c1_55 = arith.constant 1 : index
    %c0_56 = arith.constant 0 : index
    %c0_57 = arith.constant 0 : index
    %c0_58 = arith.constant 0 : index
    %50 = vector.load %arg4[%c1_55, %c0_56, %c0_57, %c0_58] : memref<2x3x8x8xbf16, #tpu.memory_space<vmem>>, vector<1x1x8x8xbf16>
    %51 = vector.shape_cast %50 : vector<1x1x8x8xbf16> to vector<8x8xbf16>
    %52 = vector.extract_strided_slice %48 {offsets = [0, 0], sizes = [8, 32], strides = [1, 1]} : vector<8x34xbf16> to vector<8x32xbf16>
    %cst_59 = arith.constant dense<0.000000e+00> : vector<8x32xf32>
    %53 = tpu.matmul %51, %52, %cst_59 {dimension_numbers = #tpu.dot_dimension_numbers<[1], [0], [0], [1], [0, 0, 1, 1], [], []>} : vector<8x8xbf16>, vector<8x32xbf16>, vector<8x32xf32> -> vector<8x32xf32>
    %54 = arith.addf %49, %53 : vector<8x32xf32>
    %c1_60 = arith.constant 1 : index
    %c1_61 = arith.constant 1 : index
    %c0_62 = arith.constant 0 : index
    %c0_63 = arith.constant 0 : index
    %55 = vector.load %arg4[%c1_60, %c1_61, %c0_62, %c0_63] : memref<2x3x8x8xbf16, #tpu.memory_space<vmem>>, vector<1x1x8x8xbf16>
    %56 = vector.shape_cast %55 : vector<1x1x8x8xbf16> to vector<8x8xbf16>
    %57 = vector.extract_strided_slice %48 {offsets = [0, 1], sizes = [8, 32], strides = [1, 1]} : vector<8x34xbf16> to vector<8x32xbf16>
    %cst_64 = arith.constant dense<0.000000e+00> : vector<8x32xf32>
    %58 = tpu.matmul %56, %57, %cst_64 {dimension_numbers = #tpu.dot_dimension_numbers<[1], [0], [0], [1], [0, 0, 1, 1], [], []>} : vector<8x8xbf16>, vector<8x32xbf16>, vector<8x32xf32> -> vector<8x32xf32>
    %59 = arith.addf %54, %58 : vector<8x32xf32>
    %c1_65 = arith.constant 1 : index
    %c2_66 = arith.constant 2 : index
    %c0_67 = arith.constant 0 : index
    %c0_68 = arith.constant 0 : index
    %60 = vector.load %arg4[%c1_65, %c2_66, %c0_67, %c0_68] : memref<2x3x8x8xbf16, #tpu.memory_space<vmem>>, vector<1x1x8x8xbf16>
    %61 = vector.shape_cast %60 : vector<1x1x8x8xbf16> to vector<8x8xbf16>
    %62 = vector.extract_strided_slice %48 {offsets = [0, 2], sizes = [8, 32], strides = [1, 1]} : vector<8x34xbf16> to vector<8x32xbf16>
    %cst_69 = arith.constant dense<0.000000e+00> : vector<8x32xf32>
    %63 = tpu.matmul %61, %62, %cst_69 {dimension_numbers = #tpu.dot_dimension_numbers<[1], [0], [0], [1], [0, 0, 1, 1], [], []>} : vector<8x8xbf16>, vector<8x32xbf16>, vector<8x32xf32> -> vector<8x32xf32>
    %64 = arith.addf %59, %63 : vector<8x32xf32>
    %c0_70 = arith.constant 0 : index
    %c1_71 = arith.constant 1 : index
    %c0_72 = arith.constant 0 : index
    %c0_73 = arith.constant 0 : index
    %65 = vector.load %arg5[%c0_70, %c1_71, %c0_72, %c0_73] : memref<1x16x8x32xf32, #tpu.memory_space<vmem>>, vector<1x1x8x32xf32>
    %66 = vector.shape_cast %65 : vector<1x1x8x32xf32> to vector<8x32xf32>
    %67 = vector.shape_cast %64 : vector<8x32xf32> to vector<1x1x8x32xf32>
    tpu.vector_store %arg5[%c0_70, %c1_71, %c0_72, %c0_73], %67 {strides = array<i32>} : memref<1x16x8x32xf32, #tpu.memory_space<vmem>>, vector<1x1x8x32xf32>,
    %68 = arith.addf %45, %64 : vector<8x32xf32>
    %69 = arith.mulf %64, %64 : vector<8x32xf32>
    %70 = arith.addf %47, %69 : vector<8x32xf32>
    %71 = tpu.concatenate %6, %8 in 0 : vector<4x34xbf16>, vector<4x34xbf16> -> vector<8x34xbf16>
    %cst_74 = arith.constant 0.000000e+00 : f32
    %72 = vector.broadcast %cst_74 : f32 to vector<8x32xf32>
    %c0_75 = arith.constant 0 : index
    %c0_76 = arith.constant 0 : index
    %c0_77 = arith.constant 0 : index
    %c0_78 = arith.constant 0 : index
    %73 = vector.load %arg4[%c0_75, %c0_76, %c0_77, %c0_78] : memref<2x3x8x8xbf16, #tpu.memory_space<vmem>>, vector<1x1x8x8xbf16>
    %74 = vector.shape_cast %73 : vector<1x1x8x8xbf16> to vector<8x8xbf16>
    %75 = vector.extract_strided_slice %71 {offsets = [0, 0], sizes = [8, 32], strides = [1, 1]} : vector<8x34xbf16> to vector<8x32xbf16>
    %cst_79 = arith.constant dense<0.000000e+00> : vector<8x32xf32>
    %76 = tpu.matmul %74, %75, %cst_79 {dimension_numbers = #tpu.dot_dimension_numbers<[1], [0], [0], [1], [0, 0, 1, 1], [], []>} : vector<8x8xbf16>, vector<8x32xbf16>, vector<8x32xf32> -> vector<8x32xf32>
    %77 = arith.addf %72, %76 : vector<8x32xf32>
    %c0_80 = arith.constant 0 : index
    %c1_81 = arith.constant 1 : index
    %c0_82 = arith.constant 0 : index
    %c0_83 = arith.constant 0 : index
    %78 = vector.load %arg4[%c0_80, %c1_81, %c0_82, %c0_83] : memref<2x3x8x8xbf16, #tpu.memory_space<vmem>>, vector<1x1x8x8xbf16>
    %79 = vector.shape_cast %78 : vector<1x1x8x8xbf16> to vector<8x8xbf16>
    %80 = vector.extract_strided_slice %71 {offsets = [0, 1], sizes = [8, 32], strides = [1, 1]} : vector<8x34xbf16> to vector<8x32xbf16>
    %cst_84 = arith.constant dense<0.000000e+00> : vector<8x32xf32>
    %81 = tpu.matmul %79, %80, %cst_84 {dimension_numbers = #tpu.dot_dimension_numbers<[1], [0], [0], [1], [0, 0, 1, 1], [], []>} : vector<8x8xbf16>, vector<8x32xbf16>, vector<8x32xf32> -> vector<8x32xf32>
    %82 = arith.addf %77, %81 : vector<8x32xf32>
    %c0_85 = arith.constant 0 : index
    %c2_86 = arith.constant 2 : index
    %c0_87 = arith.constant 0 : index
    %c0_88 = arith.constant 0 : index
    %83 = vector.load %arg4[%c0_85, %c2_86, %c0_87, %c0_88] : memref<2x3x8x8xbf16, #tpu.memory_space<vmem>>, vector<1x1x8x8xbf16>
    %84 = vector.shape_cast %83 : vector<1x1x8x8xbf16> to vector<8x8xbf16>
    %85 = vector.extract_strided_slice %71 {offsets = [0, 2], sizes = [8, 32], strides = [1, 1]} : vector<8x34xbf16> to vector<8x32xbf16>
    %cst_89 = arith.constant dense<0.000000e+00> : vector<8x32xf32>
    %86 = tpu.matmul %84, %85, %cst_89 {dimension_numbers = #tpu.dot_dimension_numbers<[1], [0], [0], [1], [0, 0, 1, 1], [], []>} : vector<8x8xbf16>, vector<8x32xbf16>, vector<8x32xf32> -> vector<8x32xf32>
    %87 = arith.addf %82, %86 : vector<8x32xf32>
    %c0_90 = arith.constant 0 : index
    %c2_91 = arith.constant 2 : index
    %c0_92 = arith.constant 0 : index
    %c0_93 = arith.constant 0 : index
    %88 = vector.load %arg5[%c0_90, %c2_91, %c0_92, %c0_93] : memref<1x16x8x32xf32, #tpu.memory_space<vmem>>, vector<1x1x8x32xf32>
    %89 = vector.shape_cast %88 : vector<1x1x8x32xf32> to vector<8x32xf32>
    %90 = vector.shape_cast %87 : vector<8x32xf32> to vector<1x1x8x32xf32>
    tpu.vector_store %arg5[%c0_90, %c2_91, %c0_92, %c0_93], %90 {strides = array<i32>} : memref<1x16x8x32xf32, #tpu.memory_space<vmem>>, vector<1x1x8x32xf32>,
    %91 = arith.addf %68, %87 : vector<8x32xf32>
    %92 = arith.mulf %87, %87 : vector<8x32xf32>
    %93 = arith.addf %70, %92 : vector<8x32xf32>
    %94 = tpu.concatenate %8, %10 in 0 : vector<4x34xbf16>, vector<4x34xbf16> -> vector<8x34xbf16>
    %cst_94 = arith.constant 0.000000e+00 : f32
    %95 = vector.broadcast %cst_94 : f32 to vector<8x32xf32>
    %c1_95 = arith.constant 1 : index
    %c0_96 = arith.constant 0 : index
    %c0_97 = arith.constant 0 : index
    %c0_98 = arith.constant 0 : index
    %96 = vector.load %arg4[%c1_95, %c0_96, %c0_97, %c0_98] : memref<2x3x8x8xbf16, #tpu.memory_space<vmem>>, vector<1x1x8x8xbf16>
    %97 = vector.shape_cast %96 : vector<1x1x8x8xbf16> to vector<8x8xbf16>
    %98 = vector.extract_strided_slice %94 {offsets = [0, 0], sizes = [8, 32], strides = [1, 1]} : vector<8x34xbf16> to vector<8x32xbf16>
    %cst_99 = arith.constant dense<0.000000e+00> : vector<8x32xf32>
    %99 = tpu.matmul %97, %98, %cst_99 {dimension_numbers = #tpu.dot_dimension_numbers<[1], [0], [0], [1], [0, 0, 1, 1], [], []>} : vector<8x8xbf16>, vector<8x32xbf16>, vector<8x32xf32> -> vector<8x32xf32>
    %100 = arith.addf %95, %99 : vector<8x32xf32>
    %c1_100 = arith.constant 1 : index
    %c1_101 = arith.constant 1 : index
    %c0_102 = arith.constant 0 : index
    %c0_103 = arith.constant 0 : index
    %101 = vector.load %arg4[%c1_100, %c1_101, %c0_102, %c0_103] : memref<2x3x8x8xbf16, #tpu.memory_space<vmem>>, vector<1x1x8x8xbf16>
    %102 = vector.shape_cast %101 : vector<1x1x8x8xbf16> to vector<8x8xbf16>
    %103 = vector.extract_strided_slice %94 {offsets = [0, 1], sizes = [8, 32], strides = [1, 1]} : vector<8x34xbf16> to vector<8x32xbf16>
    %cst_104 = arith.constant dense<0.000000e+00> : vector<8x32xf32>
    %104 = tpu.matmul %102, %103, %cst_104 {dimension_numbers = #tpu.dot_dimension_numbers<[1], [0], [0], [1], [0, 0, 1, 1], [], []>} : vector<8x8xbf16>, vector<8x32xbf16>, vector<8x32xf32> -> vector<8x32xf32>
    %105 = arith.addf %100, %104 : vector<8x32xf32>
    %c1_105 = arith.constant 1 : index
    %c2_106 = arith.constant 2 : index
    %c0_107 = arith.constant 0 : index
    %c0_108 = arith.constant 0 : index
    %106 = vector.load %arg4[%c1_105, %c2_106, %c0_107, %c0_108] : memref<2x3x8x8xbf16, #tpu.memory_space<vmem>>, vector<1x1x8x8xbf16>
    %107 = vector.shape_cast %106 : vector<1x1x8x8xbf16> to vector<8x8xbf16>
    %108 = vector.extract_strided_slice %94 {offsets = [0, 2], sizes = [8, 32], strides = [1, 1]} : vector<8x34xbf16> to vector<8x32xbf16>
    %cst_109 = arith.constant dense<0.000000e+00> : vector<8x32xf32>
    %109 = tpu.matmul %107, %108, %cst_109 {dimension_numbers = #tpu.dot_dimension_numbers<[1], [0], [0], [1], [0, 0, 1, 1], [], []>} : vector<8x8xbf16>, vector<8x32xbf16>, vector<8x32xf32> -> vector<8x32xf32>
    %110 = arith.addf %105, %109 : vector<8x32xf32>
    %c0_110 = arith.constant 0 : index
    %c3_111 = arith.constant 3 : index
    %c0_112 = arith.constant 0 : index
    %c0_113 = arith.constant 0 : index
    %111 = vector.load %arg5[%c0_110, %c3_111, %c0_112, %c0_113] : memref<1x16x8x32xf32, #tpu.memory_space<vmem>>, vector<1x1x8x32xf32>
    %112 = vector.shape_cast %111 : vector<1x1x8x32xf32> to vector<8x32xf32>
    %113 = vector.shape_cast %110 : vector<8x32xf32> to vector<1x1x8x32xf32>
    tpu.vector_store %arg5[%c0_110, %c3_111, %c0_112, %c0_113], %113 {strides = array<i32>} : memref<1x16x8x32xf32, #tpu.memory_space<vmem>>, vector<1x1x8x32xf32>,
    %114 = arith.addf %91, %110 : vector<8x32xf32>
    %115 = arith.mulf %110, %110 : vector<8x32xf32>
    %116 = arith.addf %93, %115 : vector<8x32xf32>
    %117 = tpu.concatenate %8, %10 in 0 : vector<4x34xbf16>, vector<4x34xbf16> -> vector<8x34xbf16>
    %cst_114 = arith.constant 0.000000e+00 : f32
    %118 = vector.broadcast %cst_114 : f32 to vector<8x32xf32>
    %c0_115 = arith.constant 0 : index
    %c0_116 = arith.constant 0 : index
    %c0_117 = arith.constant 0 : index
    %c0_118 = arith.constant 0 : index
    %119 = vector.load %arg4[%c0_115, %c0_116, %c0_117, %c0_118] : memref<2x3x8x8xbf16, #tpu.memory_space<vmem>>, vector<1x1x8x8xbf16>
    %120 = vector.shape_cast %119 : vector<1x1x8x8xbf16> to vector<8x8xbf16>
    %121 = vector.extract_strided_slice %117 {offsets = [0, 0], sizes = [8, 32], strides = [1, 1]} : vector<8x34xbf16> to vector<8x32xbf16>
    %cst_119 = arith.constant dense<0.000000e+00> : vector<8x32xf32>
    %122 = tpu.matmul %120, %121, %cst_119 {dimension_numbers = #tpu.dot_dimension_numbers<[1], [0], [0], [1], [0, 0, 1, 1], [], []>} : vector<8x8xbf16>, vector<8x32xbf16>, vector<8x32xf32> -> vector<8x32xf32>
    %123 = arith.addf %118, %122 : vector<8x32xf32>
    %c0_120 = arith.constant 0 : index
    %c1_121 = arith.constant 1 : index
    %c0_122 = arith.constant 0 : index
    %c0_123 = arith.constant 0 : index
    %124 = vector.load %arg4[%c0_120, %c1_121, %c0_122, %c0_123] : memref<2x3x8x8xbf16, #tpu.memory_space<vmem>>, vector<1x1x8x8xbf16>
    %125 = vector.shape_cast %124 : vector<1x1x8x8xbf16> to vector<8x8xbf16>
    %126 = vector.extract_strided_slice %117 {offsets = [0, 1], sizes = [8, 32], strides = [1, 1]} : vector<8x34xbf16> to vector<8x32xbf16>
    %cst_124 = arith.constant dense<0.000000e+00> : vector<8x32xf32>
    %127 = tpu.matmul %125, %126, %cst_124 {dimension_numbers = #tpu.dot_dimension_numbers<[1], [0], [0], [1], [0, 0, 1, 1], [], []>} : vector<8x8xbf16>, vector<8x32xbf16>, vector<8x32xf32> -> vector<8x32xf32>
    %128 = arith.addf %123, %127 : vector<8x32xf32>
    %c0_125 = arith.constant 0 : index
    %c2_126 = arith.constant 2 : index
    %c0_127 = arith.constant 0 : index
    %c0_128 = arith.constant 0 : index
    %129 = vector.load %arg4[%c0_125, %c2_126, %c0_127, %c0_128] : memref<2x3x8x8xbf16, #tpu.memory_space<vmem>>, vector<1x1x8x8xbf16>
    %130 = vector.shape_cast %129 : vector<1x1x8x8xbf16> to vector<8x8xbf16>
    %131 = vector.extract_strided_slice %117 {offsets = [0, 2], sizes = [8, 32], strides = [1, 1]} : vector<8x34xbf16> to vector<8x32xbf16>
    %cst_129 = arith.constant dense<0.000000e+00> : vector<8x32xf32>
    %132 = tpu.matmul %130, %131, %cst_129 {dimension_numbers = #tpu.dot_dimension_numbers<[1], [0], [0], [1], [0, 0, 1, 1], [], []>} : vector<8x8xbf16>, vector<8x32xbf16>, vector<8x32xf32> -> vector<8x32xf32>
    %133 = arith.addf %128, %132 : vector<8x32xf32>
    %c0_130 = arith.constant 0 : index
    %c4_131 = arith.constant 4 : index
    %c0_132 = arith.constant 0 : index
    %c0_133 = arith.constant 0 : index
    %134 = vector.load %arg5[%c0_130, %c4_131, %c0_132, %c0_133] : memref<1x16x8x32xf32, #tpu.memory_space<vmem>>, vector<1x1x8x32xf32>
    %135 = vector.shape_cast %134 : vector<1x1x8x32xf32> to vector<8x32xf32>
    %136 = vector.shape_cast %133 : vector<8x32xf32> to vector<1x1x8x32xf32>
    tpu.vector_store %arg5[%c0_130, %c4_131, %c0_132, %c0_133], %136 {strides = array<i32>} : memref<1x16x8x32xf32, #tpu.memory_space<vmem>>, vector<1x1x8x32xf32>,
    %137 = arith.addf %114, %133 : vector<8x32xf32>
    %138 = arith.mulf %133, %133 : vector<8x32xf32>
    %139 = arith.addf %116, %138 : vector<8x32xf32>
    %140 = tpu.concatenate %10, %12 in 0 : vector<4x34xbf16>, vector<4x34xbf16> -> vector<8x34xbf16>
    %cst_134 = arith.constant 0.000000e+00 : f32
    %141 = vector.broadcast %cst_134 : f32 to vector<8x32xf32>
    %c1_135 = arith.constant 1 : index
    %c0_136 = arith.constant 0 : index
    %c0_137 = arith.constant 0 : index
    %c0_138 = arith.constant 0 : index
    %142 = vector.load %arg4[%c1_135, %c0_136, %c0_137, %c0_138] : memref<2x3x8x8xbf16, #tpu.memory_space<vmem>>, vector<1x1x8x8xbf16>
    %143 = vector.shape_cast %142 : vector<1x1x8x8xbf16> to vector<8x8xbf16>
    %144 = vector.extract_strided_slice %140 {offsets = [0, 0], sizes = [8, 32], strides = [1, 1]} : vector<8x34xbf16> to vector<8x32xbf16>
    %cst_139 = arith.constant dense<0.000000e+00> : vector<8x32xf32>
    %145 = tpu.matmul %143, %144, %cst_139 {dimension_numbers = #tpu.dot_dimension_numbers<[1], [0], [0], [1], [0, 0, 1, 1], [], []>} : vector<8x8xbf16>, vector<8x32xbf16>, vector<8x32xf32> -> vector<8x32xf32>
    %146 = arith.addf %141, %145 : vector<8x32xf32>
    %c1_140 = arith.constant 1 : index
    %c1_141 = arith.constant 1 : index
    %c0_142 = arith.constant 0 : index
    %c0_143 = arith.constant 0 : index
    %147 = vector.load %arg4[%c1_140, %c1_141, %c0_142, %c0_143] : memref<2x3x8x8xbf16, #tpu.memory_space<vmem>>, vector<1x1x8x8xbf16>
    %148 = vector.shape_cast %147 : vector<1x1x8x8xbf16> to vector<8x8xbf16>
    %149 = vector.extract_strided_slice %140 {offsets = [0, 1], sizes = [8, 32], strides = [1, 1]} : vector<8x34xbf16> to vector<8x32xbf16>
    %cst_144 = arith.constant dense<0.000000e+00> : vector<8x32xf32>
    %150 = tpu.matmul %148, %149, %cst_144 {dimension_numbers = #tpu.dot_dimension_numbers<[1], [0], [0], [1], [0, 0, 1, 1], [], []>} : vector<8x8xbf16>, vector<8x32xbf16>, vector<8x32xf32> -> vector<8x32xf32>
    %151 = arith.addf %146, %150 : vector<8x32xf32>
    %c1_145 = arith.constant 1 : index
    %c2_146 = arith.constant 2 : index
    %c0_147 = arith.constant 0 : index
    %c0_148 = arith.constant 0 : index
    %152 = vector.load %arg4[%c1_145, %c2_146, %c0_147, %c0_148] : memref<2x3x8x8xbf16, #tpu.memory_space<vmem>>, vector<1x1x8x8xbf16>
    %153 = vector.shape_cast %152 : vector<1x1x8x8xbf16> to vector<8x8xbf16>
    %154 = vector.extract_strided_slice %140 {offsets = [0, 2], sizes = [8, 32], strides = [1, 1]} : vector<8x34xbf16> to vector<8x32xbf16>
    %cst_149 = arith.constant dense<0.000000e+00> : vector<8x32xf32>
    %155 = tpu.matmul %153, %154, %cst_149 {dimension_numbers = #tpu.dot_dimension_numbers<[1], [0], [0], [1], [0, 0, 1, 1], [], []>} : vector<8x8xbf16>, vector<8x32xbf16>, vector<8x32xf32> -> vector<8x32xf32>
    %156 = arith.addf %151, %155 : vector<8x32xf32>
    %c0_150 = arith.constant 0 : index
    %c5_151 = arith.constant 5 : index
    %c0_152 = arith.constant 0 : index
    %c0_153 = arith.constant 0 : index
    %157 = vector.load %arg5[%c0_150, %c5_151, %c0_152, %c0_153] : memref<1x16x8x32xf32, #tpu.memory_space<vmem>>, vector<1x1x8x32xf32>
    %158 = vector.shape_cast %157 : vector<1x1x8x32xf32> to vector<8x32xf32>
    %159 = vector.shape_cast %156 : vector<8x32xf32> to vector<1x1x8x32xf32>
    tpu.vector_store %arg5[%c0_150, %c5_151, %c0_152, %c0_153], %159 {strides = array<i32>} : memref<1x16x8x32xf32, #tpu.memory_space<vmem>>, vector<1x1x8x32xf32>,
    %160 = arith.addf %137, %156 : vector<8x32xf32>
    %161 = arith.mulf %156, %156 : vector<8x32xf32>
    %162 = arith.addf %139, %161 : vector<8x32xf32>
    %163 = tpu.concatenate %10, %12 in 0 : vector<4x34xbf16>, vector<4x34xbf16> -> vector<8x34xbf16>
    %cst_154 = arith.constant 0.000000e+00 : f32
    %164 = vector.broadcast %cst_154 : f32 to vector<8x32xf32>
    %c0_155 = arith.constant 0 : index
    %c0_156 = arith.constant 0 : index
    %c0_157 = arith.constant 0 : index
    %c0_158 = arith.constant 0 : index
    %165 = vector.load %arg4[%c0_155, %c0_156, %c0_157, %c0_158] : memref<2x3x8x8xbf16, #tpu.memory_space<vmem>>, vector<1x1x8x8xbf16>
    %166 = vector.shape_cast %165 : vector<1x1x8x8xbf16> to vector<8x8xbf16>
    %167 = vector.extract_strided_slice %163 {offsets = [0, 0], sizes = [8, 32], strides = [1, 1]} : vector<8x34xbf16> to vector<8x32xbf16>
    %cst_159 = arith.constant dense<0.000000e+00> : vector<8x32xf32>
    %168 = tpu.matmul %166, %167, %cst_159 {dimension_numbers = #tpu.dot_dimension_numbers<[1], [0], [0], [1], [0, 0, 1, 1], [], []>} : vector<8x8xbf16>, vector<8x32xbf16>, vector<8x32xf32> -> vector<8x32xf32>
    %169 = arith.addf %164, %168 : vector<8x32xf32>
    %c0_160 = arith.constant 0 : index
    %c1_161 = arith.constant 1 : index
    %c0_162 = arith.constant 0 : index
    %c0_163 = arith.constant 0 : index
    %170 = vector.load %arg4[%c0_160, %c1_161, %c0_162, %c0_163] : memref<2x3x8x8xbf16, #tpu.memory_space<vmem>>, vector<1x1x8x8xbf16>
    %171 = vector.shape_cast %170 : vector<1x1x8x8xbf16> to vector<8x8xbf16>
    %172 = vector.extract_strided_slice %163 {offsets = [0, 1], sizes = [8, 32], strides = [1, 1]} : vector<8x34xbf16> to vector<8x32xbf16>
    %cst_164 = arith.constant dense<0.000000e+00> : vector<8x32xf32>
    %173 = tpu.matmul %171, %172, %cst_164 {dimension_numbers = #tpu.dot_dimension_numbers<[1], [0], [0], [1], [0, 0, 1, 1], [], []>} : vector<8x8xbf16>, vector<8x32xbf16>, vector<8x32xf32> -> vector<8x32xf32>
    %174 = arith.addf %169, %173 : vector<8x32xf32>
    %c0_165 = arith.constant 0 : index
    %c2_166 = arith.constant 2 : index
    %c0_167 = arith.constant 0 : index
    %c0_168 = arith.constant 0 : index
    %175 = vector.load %arg4[%c0_165, %c2_166, %c0_167, %c0_168] : memref<2x3x8x8xbf16, #tpu.memory_space<vmem>>, vector<1x1x8x8xbf16>
    %176 = vector.shape_cast %175 : vector<1x1x8x8xbf16> to vector<8x8xbf16>
    %177 = vector.extract_strided_slice %163 {offsets = [0, 2], sizes = [8, 32], strides = [1, 1]} : vector<8x34xbf16> to vector<8x32xbf16>
    %cst_169 = arith.constant dense<0.000000e+00> : vector<8x32xf32>
    %178 = tpu.matmul %176, %177, %cst_169 {dimension_numbers = #tpu.dot_dimension_numbers<[1], [0], [0], [1], [0, 0, 1, 1], [], []>} : vector<8x8xbf16>, vector<8x32xbf16>, vector<8x32xf32> -> vector<8x32xf32>
    %179 = arith.addf %174, %178 : vector<8x32xf32>
    %c0_170 = arith.constant 0 : index
    %c6_171 = arith.constant 6 : index
    %c0_172 = arith.constant 0 : index
    %c0_173 = arith.constant 0 : index
    %180 = vector.load %arg5[%c0_170, %c6_171, %c0_172, %c0_173] : memref<1x16x8x32xf32, #tpu.memory_space<vmem>>, vector<1x1x8x32xf32>
    %181 = vector.shape_cast %180 : vector<1x1x8x32xf32> to vector<8x32xf32>
    %182 = vector.shape_cast %179 : vector<8x32xf32> to vector<1x1x8x32xf32>
    tpu.vector_store %arg5[%c0_170, %c6_171, %c0_172, %c0_173], %182 {strides = array<i32>} : memref<1x16x8x32xf32, #tpu.memory_space<vmem>>, vector<1x1x8x32xf32>,
    %183 = arith.addf %160, %179 : vector<8x32xf32>
    %184 = arith.mulf %179, %179 : vector<8x32xf32>
    %185 = arith.addf %162, %184 : vector<8x32xf32>
    %186 = tpu.concatenate %12, %14 in 0 : vector<4x34xbf16>, vector<4x34xbf16> -> vector<8x34xbf16>
    %cst_174 = arith.constant 0.000000e+00 : f32
    %187 = vector.broadcast %cst_174 : f32 to vector<8x32xf32>
    %c1_175 = arith.constant 1 : index
    %c0_176 = arith.constant 0 : index
    %c0_177 = arith.constant 0 : index
    %c0_178 = arith.constant 0 : index
    %188 = vector.load %arg4[%c1_175, %c0_176, %c0_177, %c0_178] : memref<2x3x8x8xbf16, #tpu.memory_space<vmem>>, vector<1x1x8x8xbf16>
    %189 = vector.shape_cast %188 : vector<1x1x8x8xbf16> to vector<8x8xbf16>
    %190 = vector.extract_strided_slice %186 {offsets = [0, 0], sizes = [8, 32], strides = [1, 1]} : vector<8x34xbf16> to vector<8x32xbf16>
    %cst_179 = arith.constant dense<0.000000e+00> : vector<8x32xf32>
    %191 = tpu.matmul %189, %190, %cst_179 {dimension_numbers = #tpu.dot_dimension_numbers<[1], [0], [0], [1], [0, 0, 1, 1], [], []>} : vector<8x8xbf16>, vector<8x32xbf16>, vector<8x32xf32> -> vector<8x32xf32>
    %192 = arith.addf %187, %191 : vector<8x32xf32>
    %c1_180 = arith.constant 1 : index
    %c1_181 = arith.constant 1 : index
    %c0_182 = arith.constant 0 : index
    %c0_183 = arith.constant 0 : index
    %193 = vector.load %arg4[%c1_180, %c1_181, %c0_182, %c0_183] : memref<2x3x8x8xbf16, #tpu.memory_space<vmem>>, vector<1x1x8x8xbf16>
    %194 = vector.shape_cast %193 : vector<1x1x8x8xbf16> to vector<8x8xbf16>
    %195 = vector.extract_strided_slice %186 {offsets = [0, 1], sizes = [8, 32], strides = [1, 1]} : vector<8x34xbf16> to vector<8x32xbf16>
    %cst_184 = arith.constant dense<0.000000e+00> : vector<8x32xf32>
    %196 = tpu.matmul %194, %195, %cst_184 {dimension_numbers = #tpu.dot_dimension_numbers<[1], [0], [0], [1], [0, 0, 1, 1], [], []>} : vector<8x8xbf16>, vector<8x32xbf16>, vector<8x32xf32> -> vector<8x32xf32>
    %197 = arith.addf %192, %196 : vector<8x32xf32>
    %c1_185 = arith.constant 1 : index
    %c2_186 = arith.constant 2 : index
    %c0_187 = arith.constant 0 : index
    %c0_188 = arith.constant 0 : index
    %198 = vector.load %arg4[%c1_185, %c2_186, %c0_187, %c0_188] : memref<2x3x8x8xbf16, #tpu.memory_space<vmem>>, vector<1x1x8x8xbf16>
    %199 = vector.shape_cast %198 : vector<1x1x8x8xbf16> to vector<8x8xbf16>
    %200 = vector.extract_strided_slice %186 {offsets = [0, 2], sizes = [8, 32], strides = [1, 1]} : vector<8x34xbf16> to vector<8x32xbf16>
    %cst_189 = arith.constant dense<0.000000e+00> : vector<8x32xf32>
    %201 = tpu.matmul %199, %200, %cst_189 {dimension_numbers = #tpu.dot_dimension_numbers<[1], [0], [0], [1], [0, 0, 1, 1], [], []>} : vector<8x8xbf16>, vector<8x32xbf16>, vector<8x32xf32> -> vector<8x32xf32>
    %202 = arith.addf %197, %201 : vector<8x32xf32>
    %c0_190 = arith.constant 0 : index
    %c7_191 = arith.constant 7 : index
    %c0_192 = arith.constant 0 : index
    %c0_193 = arith.constant 0 : index
    %203 = vector.load %arg5[%c0_190, %c7_191, %c0_192, %c0_193] : memref<1x16x8x32xf32, #tpu.memory_space<vmem>>, vector<1x1x8x32xf32>
    %204 = vector.shape_cast %203 : vector<1x1x8x32xf32> to vector<8x32xf32>
    %205 = vector.shape_cast %202 : vector<8x32xf32> to vector<1x1x8x32xf32>
    tpu.vector_store %arg5[%c0_190, %c7_191, %c0_192, %c0_193], %205 {strides = array<i32>} : memref<1x16x8x32xf32, #tpu.memory_space<vmem>>, vector<1x1x8x32xf32>,
    %206 = arith.addf %183, %202 : vector<8x32xf32>
    %207 = arith.mulf %202, %202 : vector<8x32xf32>
    %208 = arith.addf %185, %207 : vector<8x32xf32>
    %209 = tpu.concatenate %12, %14 in 0 : vector<4x34xbf16>, vector<4x34xbf16> -> vector<8x34xbf16>
    %cst_194 = arith.constant 0.000000e+00 : f32
    %210 = vector.broadcast %cst_194 : f32 to vector<8x32xf32>
    %c0_195 = arith.constant 0 : index
    %c0_196 = arith.constant 0 : index
    %c0_197 = arith.constant 0 : index
    %c0_198 = arith.constant 0 : index
    %211 = vector.load %arg4[%c0_195, %c0_196, %c0_197, %c0_198] : memref<2x3x8x8xbf16, #tpu.memory_space<vmem>>, vector<1x1x8x8xbf16>
    %212 = vector.shape_cast %211 : vector<1x1x8x8xbf16> to vector<8x8xbf16>
    %213 = vector.extract_strided_slice %209 {offsets = [0, 0], sizes = [8, 32], strides = [1, 1]} : vector<8x34xbf16> to vector<8x32xbf16>
    %cst_199 = arith.constant dense<0.000000e+00> : vector<8x32xf32>
    %214 = tpu.matmul %212, %213, %cst_199 {dimension_numbers = #tpu.dot_dimension_numbers<[1], [0], [0], [1], [0, 0, 1, 1], [], []>} : vector<8x8xbf16>, vector<8x32xbf16>, vector<8x32xf32> -> vector<8x32xf32>
    %215 = arith.addf %210, %214 : vector<8x32xf32>
    %c0_200 = arith.constant 0 : index
    %c1_201 = arith.constant 1 : index
    %c0_202 = arith.constant 0 : index
    %c0_203 = arith.constant 0 : index
    %216 = vector.load %arg4[%c0_200, %c1_201, %c0_202, %c0_203] : memref<2x3x8x8xbf16, #tpu.memory_space<vmem>>, vector<1x1x8x8xbf16>
    %217 = vector.shape_cast %216 : vector<1x1x8x8xbf16> to vector<8x8xbf16>
    %218 = vector.extract_strided_slice %209 {offsets = [0, 1], sizes = [8, 32], strides = [1, 1]} : vector<8x34xbf16> to vector<8x32xbf16>
    %cst_204 = arith.constant dense<0.000000e+00> : vector<8x32xf32>
    %219 = tpu.matmul %217, %218, %cst_204 {dimension_numbers = #tpu.dot_dimension_numbers<[1], [0], [0], [1], [0, 0, 1, 1], [], []>} : vector<8x8xbf16>, vector<8x32xbf16>, vector<8x32xf32> -> vector<8x32xf32>
    %220 = arith.addf %215, %219 : vector<8x32xf32>
    %c0_205 = arith.constant 0 : index
    %c2_206 = arith.constant 2 : index
    %c0_207 = arith.constant 0 : index
    %c0_208 = arith.constant 0 : index
    %221 = vector.load %arg4[%c0_205, %c2_206, %c0_207, %c0_208] : memref<2x3x8x8xbf16, #tpu.memory_space<vmem>>, vector<1x1x8x8xbf16>
    %222 = vector.shape_cast %221 : vector<1x1x8x8xbf16> to vector<8x8xbf16>
    %223 = vector.extract_strided_slice %209 {offsets = [0, 2], sizes = [8, 32], strides = [1, 1]} : vector<8x34xbf16> to vector<8x32xbf16>
    %cst_209 = arith.constant dense<0.000000e+00> : vector<8x32xf32>
    %224 = tpu.matmul %222, %223, %cst_209 {dimension_numbers = #tpu.dot_dimension_numbers<[1], [0], [0], [1], [0, 0, 1, 1], [], []>} : vector<8x8xbf16>, vector<8x32xbf16>, vector<8x32xf32> -> vector<8x32xf32>
    %225 = arith.addf %220, %224 : vector<8x32xf32>
    %c0_210 = arith.constant 0 : index
    %c8 = arith.constant 8 : index
    %c0_211 = arith.constant 0 : index
    %c0_212 = arith.constant 0 : index
    %226 = vector.load %arg5[%c0_210, %c8, %c0_211, %c0_212] : memref<1x16x8x32xf32, #tpu.memory_space<vmem>>, vector<1x1x8x32xf32>
    %227 = vector.shape_cast %226 : vector<1x1x8x32xf32> to vector<8x32xf32>
    %228 = vector.shape_cast %225 : vector<8x32xf32> to vector<1x1x8x32xf32>
    tpu.vector_store %arg5[%c0_210, %c8, %c0_211, %c0_212], %228 {strides = array<i32>} : memref<1x16x8x32xf32, #tpu.memory_space<vmem>>, vector<1x1x8x32xf32>,
    %229 = arith.addf %206, %225 : vector<8x32xf32>
    %230 = arith.mulf %225, %225 : vector<8x32xf32>
    %231 = arith.addf %208, %230 : vector<8x32xf32>
    %232 = tpu.concatenate %14, %16 in 0 : vector<4x34xbf16>, vector<4x34xbf16> -> vector<8x34xbf16>
    %cst_213 = arith.constant 0.000000e+00 : f32
    %233 = vector.broadcast %cst_213 : f32 to vector<8x32xf32>
    %c1_214 = arith.constant 1 : index
    %c0_215 = arith.constant 0 : index
    %c0_216 = arith.constant 0 : index
    %c0_217 = arith.constant 0 : index
    %234 = vector.load %arg4[%c1_214, %c0_215, %c0_216, %c0_217] : memref<2x3x8x8xbf16, #tpu.memory_space<vmem>>, vector<1x1x8x8xbf16>
    %235 = vector.shape_cast %234 : vector<1x1x8x8xbf16> to vector<8x8xbf16>
    %236 = vector.extract_strided_slice %232 {offsets = [0, 0], sizes = [8, 32], strides = [1, 1]} : vector<8x34xbf16> to vector<8x32xbf16>
    %cst_218 = arith.constant dense<0.000000e+00> : vector<8x32xf32>
    %237 = tpu.matmul %235, %236, %cst_218 {dimension_numbers = #tpu.dot_dimension_numbers<[1], [0], [0], [1], [0, 0, 1, 1], [], []>} : vector<8x8xbf16>, vector<8x32xbf16>, vector<8x32xf32> -> vector<8x32xf32>
    %238 = arith.addf %233, %237 : vector<8x32xf32>
    %c1_219 = arith.constant 1 : index
    %c1_220 = arith.constant 1 : index
    %c0_221 = arith.constant 0 : index
    %c0_222 = arith.constant 0 : index
    %239 = vector.load %arg4[%c1_219, %c1_220, %c0_221, %c0_222] : memref<2x3x8x8xbf16, #tpu.memory_space<vmem>>, vector<1x1x8x8xbf16>
    %240 = vector.shape_cast %239 : vector<1x1x8x8xbf16> to vector<8x8xbf16>
    %241 = vector.extract_strided_slice %232 {offsets = [0, 1], sizes = [8, 32], strides = [1, 1]} : vector<8x34xbf16> to vector<8x32xbf16>
    %cst_223 = arith.constant dense<0.000000e+00> : vector<8x32xf32>
    %242 = tpu.matmul %240, %241, %cst_223 {dimension_numbers = #tpu.dot_dimension_numbers<[1], [0], [0], [1], [0, 0, 1, 1], [], []>} : vector<8x8xbf16>, vector<8x32xbf16>, vector<8x32xf32> -> vector<8x32xf32>
    %243 = arith.addf %238, %242 : vector<8x32xf32>
    %c1_224 = arith.constant 1 : index
    %c2_225 = arith.constant 2 : index
    %c0_226 = arith.constant 0 : index
    %c0_227 = arith.constant 0 : index
    %244 = vector.load %arg4[%c1_224, %c2_225, %c0_226, %c0_227] : memref<2x3x8x8xbf16, #tpu.memory_space<vmem>>, vector<1x1x8x8xbf16>
    %245 = vector.shape_cast %244 : vector<1x1x8x8xbf16> to vector<8x8xbf16>
    %246 = vector.extract_strided_slice %232 {offsets = [0, 2], sizes = [8, 32], strides = [1, 1]} : vector<8x34xbf16> to vector<8x32xbf16>
    %cst_228 = arith.constant dense<0.000000e+00> : vector<8x32xf32>
    %247 = tpu.matmul %245, %246, %cst_228 {dimension_numbers = #tpu.dot_dimension_numbers<[1], [0], [0], [1], [0, 0, 1, 1], [], []>} : vector<8x8xbf16>, vector<8x32xbf16>, vector<8x32xf32> -> vector<8x32xf32>
    %248 = arith.addf %243, %247 : vector<8x32xf32>
    %c0_229 = arith.constant 0 : index
    %c9 = arith.constant 9 : index
    %c0_230 = arith.constant 0 : index
    %c0_231 = arith.constant 0 : index
    %249 = vector.load %arg5[%c0_229, %c9, %c0_230, %c0_231] : memref<1x16x8x32xf32, #tpu.memory_space<vmem>>, vector<1x1x8x32xf32>
    %250 = vector.shape_cast %249 : vector<1x1x8x32xf32> to vector<8x32xf32>
    %251 = vector.shape_cast %248 : vector<8x32xf32> to vector<1x1x8x32xf32>
    tpu.vector_store %arg5[%c0_229, %c9, %c0_230, %c0_231], %251 {strides = array<i32>} : memref<1x16x8x32xf32, #tpu.memory_space<vmem>>, vector<1x1x8x32xf32>,
    %252 = arith.addf %229, %248 : vector<8x32xf32>
    %253 = arith.mulf %248, %248 : vector<8x32xf32>
    %254 = arith.addf %231, %253 : vector<8x32xf32>
    %255 = tpu.concatenate %14, %16 in 0 : vector<4x34xbf16>, vector<4x34xbf16> -> vector<8x34xbf16>
    %cst_232 = arith.constant 0.000000e+00 : f32
    %256 = vector.broadcast %cst_232 : f32 to vector<8x32xf32>
    %c0_233 = arith.constant 0 : index
    %c0_234 = arith.constant 0 : index
    %c0_235 = arith.constant 0 : index
    %c0_236 = arith.constant 0 : index
    %257 = vector.load %arg4[%c0_233, %c0_234, %c0_235, %c0_236] : memref<2x3x8x8xbf16, #tpu.memory_space<vmem>>, vector<1x1x8x8xbf16>
    %258 = vector.shape_cast %257 : vector<1x1x8x8xbf16> to vector<8x8xbf16>
    %259 = vector.extract_strided_slice %255 {offsets = [0, 0], sizes = [8, 32], strides = [1, 1]} : vector<8x34xbf16> to vector<8x32xbf16>
    %cst_237 = arith.constant dense<0.000000e+00> : vector<8x32xf32>
    %260 = tpu.matmul %258, %259, %cst_237 {dimension_numbers = #tpu.dot_dimension_numbers<[1], [0], [0], [1], [0, 0, 1, 1], [], []>} : vector<8x8xbf16>, vector<8x32xbf16>, vector<8x32xf32> -> vector<8x32xf32>
    %261 = arith.addf %256, %260 : vector<8x32xf32>
    %c0_238 = arith.constant 0 : index
    %c1_239 = arith.constant 1 : index
    %c0_240 = arith.constant 0 : index
    %c0_241 = arith.constant 0 : index
    %262 = vector.load %arg4[%c0_238, %c1_239, %c0_240, %c0_241] : memref<2x3x8x8xbf16, #tpu.memory_space<vmem>>, vector<1x1x8x8xbf16>
    %263 = vector.shape_cast %262 : vector<1x1x8x8xbf16> to vector<8x8xbf16>
    %264 = vector.extract_strided_slice %255 {offsets = [0, 1], sizes = [8, 32], strides = [1, 1]} : vector<8x34xbf16> to vector<8x32xbf16>
    %cst_242 = arith.constant dense<0.000000e+00> : vector<8x32xf32>
    %265 = tpu.matmul %263, %264, %cst_242 {dimension_numbers = #tpu.dot_dimension_numbers<[1], [0], [0], [1], [0, 0, 1, 1], [], []>} : vector<8x8xbf16>, vector<8x32xbf16>, vector<8x32xf32> -> vector<8x32xf32>
    %266 = arith.addf %261, %265 : vector<8x32xf32>
    %c0_243 = arith.constant 0 : index
    %c2_244 = arith.constant 2 : index
    %c0_245 = arith.constant 0 : index
    %c0_246 = arith.constant 0 : index
    %267 = vector.load %arg4[%c0_243, %c2_244, %c0_245, %c0_246] : memref<2x3x8x8xbf16, #tpu.memory_space<vmem>>, vector<1x1x8x8xbf16>
    %268 = vector.shape_cast %267 : vector<1x1x8x8xbf16> to vector<8x8xbf16>
    %269 = vector.extract_strided_slice %255 {offsets = [0, 2], sizes = [8, 32], strides = [1, 1]} : vector<8x34xbf16> to vector<8x32xbf16>
    %cst_247 = arith.constant dense<0.000000e+00> : vector<8x32xf32>
    %270 = tpu.matmul %268, %269, %cst_247 {dimension_numbers = #tpu.dot_dimension_numbers<[1], [0], [0], [1], [0, 0, 1, 1], [], []>} : vector<8x8xbf16>, vector<8x32xbf16>, vector<8x32xf32> -> vector<8x32xf32>
    %271 = arith.addf %266, %270 : vector<8x32xf32>
    %c0_248 = arith.constant 0 : index
    %c10 = arith.constant 10 : index
    %c0_249 = arith.constant 0 : index
    %c0_250 = arith.constant 0 : index
    %272 = vector.load %arg5[%c0_248, %c10, %c0_249, %c0_250] : memref<1x16x8x32xf32, #tpu.memory_space<vmem>>, vector<1x1x8x32xf32>
    %273 = vector.shape_cast %272 : vector<1x1x8x32xf32> to vector<8x32xf32>
    %274 = vector.shape_cast %271 : vector<8x32xf32> to vector<1x1x8x32xf32>
    tpu.vector_store %arg5[%c0_248, %c10, %c0_249, %c0_250], %274 {strides = array<i32>} : memref<1x16x8x32xf32, #tpu.memory_space<vmem>>, vector<1x1x8x32xf32>,
    %275 = arith.addf %252, %271 : vector<8x32xf32>
    %276 = arith.mulf %271, %271 : vector<8x32xf32>
    %277 = arith.addf %254, %276 : vector<8x32xf32>
    %278 = tpu.concatenate %16, %18 in 0 : vector<4x34xbf16>, vector<4x34xbf16> -> vector<8x34xbf16>
    %cst_251 = arith.constant 0.000000e+00 : f32
    %279 = vector.broadcast %cst_251 : f32 to vector<8x32xf32>
    %c1_252 = arith.constant 1 : index
    %c0_253 = arith.constant 0 : index
    %c0_254 = arith.constant 0 : index
    %c0_255 = arith.constant 0 : index
    %280 = vector.load %arg4[%c1_252, %c0_253, %c0_254, %c0_255] : memref<2x3x8x8xbf16, #tpu.memory_space<vmem>>, vector<1x1x8x8xbf16>
    %281 = vector.shape_cast %280 : vector<1x1x8x8xbf16> to vector<8x8xbf16>
    %282 = vector.extract_strided_slice %278 {offsets = [0, 0], sizes = [8, 32], strides = [1, 1]} : vector<8x34xbf16> to vector<8x32xbf16>
    %cst_256 = arith.constant dense<0.000000e+00> : vector<8x32xf32>
    %283 = tpu.matmul %281, %282, %cst_256 {dimension_numbers = #tpu.dot_dimension_numbers<[1], [0], [0], [1], [0, 0, 1, 1], [], []>} : vector<8x8xbf16>, vector<8x32xbf16>, vector<8x32xf32> -> vector<8x32xf32>
    %284 = arith.addf %279, %283 : vector<8x32xf32>
    %c1_257 = arith.constant 1 : index
    %c1_258 = arith.constant 1 : index
    %c0_259 = arith.constant 0 : index
    %c0_260 = arith.constant 0 : index
    %285 = vector.load %arg4[%c1_257, %c1_258, %c0_259, %c0_260] : memref<2x3x8x8xbf16, #tpu.memory_space<vmem>>, vector<1x1x8x8xbf16>
    %286 = vector.shape_cast %285 : vector<1x1x8x8xbf16> to vector<8x8xbf16>
    %287 = vector.extract_strided_slice %278 {offsets = [0, 1], sizes = [8, 32], strides = [1, 1]} : vector<8x34xbf16> to vector<8x32xbf16>
    %cst_261 = arith.constant dense<0.000000e+00> : vector<8x32xf32>
    %288 = tpu.matmul %286, %287, %cst_261 {dimension_numbers = #tpu.dot_dimension_numbers<[1], [0], [0], [1], [0, 0, 1, 1], [], []>} : vector<8x8xbf16>, vector<8x32xbf16>, vector<8x32xf32> -> vector<8x32xf32>
    %289 = arith.addf %284, %288 : vector<8x32xf32>
    %c1_262 = arith.constant 1 : index
    %c2_263 = arith.constant 2 : index
    %c0_264 = arith.constant 0 : index
    %c0_265 = arith.constant 0 : index
    %290 = vector.load %arg4[%c1_262, %c2_263, %c0_264, %c0_265] : memref<2x3x8x8xbf16, #tpu.memory_space<vmem>>, vector<1x1x8x8xbf16>
    %291 = vector.shape_cast %290 : vector<1x1x8x8xbf16> to vector<8x8xbf16>
    %292 = vector.extract_strided_slice %278 {offsets = [0, 2], sizes = [8, 32], strides = [1, 1]} : vector<8x34xbf16> to vector<8x32xbf16>
    %cst_266 = arith.constant dense<0.000000e+00> : vector<8x32xf32>
    %293 = tpu.matmul %291, %292, %cst_266 {dimension_numbers = #tpu.dot_dimension_numbers<[1], [0], [0], [1], [0, 0, 1, 1], [], []>} : vector<8x8xbf16>, vector<8x32xbf16>, vector<8x32xf32> -> vector<8x32xf32>
    %294 = arith.addf %289, %293 : vector<8x32xf32>
    %c0_267 = arith.constant 0 : index
    %c11 = arith.constant 11 : index
    %c0_268 = arith.constant 0 : index
    %c0_269 = arith.constant 0 : index
    %295 = vector.load %arg5[%c0_267, %c11, %c0_268, %c0_269] : memref<1x16x8x32xf32, #tpu.memory_space<vmem>>, vector<1x1x8x32xf32>
    %296 = vector.shape_cast %295 : vector<1x1x8x32xf32> to vector<8x32xf32>
    %297 = vector.shape_cast %294 : vector<8x32xf32> to vector<1x1x8x32xf32>
    tpu.vector_store %arg5[%c0_267, %c11, %c0_268, %c0_269], %297 {strides = array<i32>} : memref<1x16x8x32xf32, #tpu.memory_space<vmem>>, vector<1x1x8x32xf32>,
    %298 = arith.addf %275, %294 : vector<8x32xf32>
    %299 = arith.mulf %294, %294 : vector<8x32xf32>
    %300 = arith.addf %277, %299 : vector<8x32xf32>
    %301 = tpu.concatenate %16, %18 in 0 : vector<4x34xbf16>, vector<4x34xbf16> -> vector<8x34xbf16>
    %cst_270 = arith.constant 0.000000e+00 : f32
    %302 = vector.broadcast %cst_270 : f32 to vector<8x32xf32>
    %c0_271 = arith.constant 0 : index
    %c0_272 = arith.constant 0 : index
    %c0_273 = arith.constant 0 : index
    %c0_274 = arith.constant 0 : index
    %303 = vector.load %arg4[%c0_271, %c0_272, %c0_273, %c0_274] : memref<2x3x8x8xbf16, #tpu.memory_space<vmem>>, vector<1x1x8x8xbf16>
    %304 = vector.shape_cast %303 : vector<1x1x8x8xbf16> to vector<8x8xbf16>
    %305 = vector.extract_strided_slice %301 {offsets = [0, 0], sizes = [8, 32], strides = [1, 1]} : vector<8x34xbf16> to vector<8x32xbf16>
    %cst_275 = arith.constant dense<0.000000e+00> : vector<8x32xf32>
    %306 = tpu.matmul %304, %305, %cst_275 {dimension_numbers = #tpu.dot_dimension_numbers<[1], [0], [0], [1], [0, 0, 1, 1], [], []>} : vector<8x8xbf16>, vector<8x32xbf16>, vector<8x32xf32> -> vector<8x32xf32>
    %307 = arith.addf %302, %306 : vector<8x32xf32>
    %c0_276 = arith.constant 0 : index
    %c1_277 = arith.constant 1 : index
    %c0_278 = arith.constant 0 : index
    %c0_279 = arith.constant 0 : index
    %308 = vector.load %arg4[%c0_276, %c1_277, %c0_278, %c0_279] : memref<2x3x8x8xbf16, #tpu.memory_space<vmem>>, vector<1x1x8x8xbf16>
    %309 = vector.shape_cast %308 : vector<1x1x8x8xbf16> to vector<8x8xbf16>
    %310 = vector.extract_strided_slice %301 {offsets = [0, 1], sizes = [8, 32], strides = [1, 1]} : vector<8x34xbf16> to vector<8x32xbf16>
    %cst_280 = arith.constant dense<0.000000e+00> : vector<8x32xf32>
    %311 = tpu.matmul %309, %310, %cst_280 {dimension_numbers = #tpu.dot_dimension_numbers<[1], [0], [0], [1], [0, 0, 1, 1], [], []>} : vector<8x8xbf16>, vector<8x32xbf16>, vector<8x32xf32> -> vector<8x32xf32>
    %312 = arith.addf %307, %311 : vector<8x32xf32>
    %c0_281 = arith.constant 0 : index
    %c2_282 = arith.constant 2 : index
    %c0_283 = arith.constant 0 : index
    %c0_284 = arith.constant 0 : index
    %313 = vector.load %arg4[%c0_281, %c2_282, %c0_283, %c0_284] : memref<2x3x8x8xbf16, #tpu.memory_space<vmem>>, vector<1x1x8x8xbf16>
    %314 = vector.shape_cast %313 : vector<1x1x8x8xbf16> to vector<8x8xbf16>
    %315 = vector.extract_strided_slice %301 {offsets = [0, 2], sizes = [8, 32], strides = [1, 1]} : vector<8x34xbf16> to vector<8x32xbf16>
    %cst_285 = arith.constant dense<0.000000e+00> : vector<8x32xf32>
    %316 = tpu.matmul %314, %315, %cst_285 {dimension_numbers = #tpu.dot_dimension_numbers<[1], [0], [0], [1], [0, 0, 1, 1], [], []>} : vector<8x8xbf16>, vector<8x32xbf16>, vector<8x32xf32> -> vector<8x32xf32>
    %317 = arith.addf %312, %316 : vector<8x32xf32>
    %c0_286 = arith.constant 0 : index
    %c12 = arith.constant 12 : index
    %c0_287 = arith.constant 0 : index
    %c0_288 = arith.constant 0 : index
    %318 = vector.load %arg5[%c0_286, %c12, %c0_287, %c0_288] : memref<1x16x8x32xf32, #tpu.memory_space<vmem>>, vector<1x1x8x32xf32>
    %319 = vector.shape_cast %318 : vector<1x1x8x32xf32> to vector<8x32xf32>
    %320 = vector.shape_cast %317 : vector<8x32xf32> to vector<1x1x8x32xf32>
    tpu.vector_store %arg5[%c0_286, %c12, %c0_287, %c0_288], %320 {strides = array<i32>} : memref<1x16x8x32xf32, #tpu.memory_space<vmem>>, vector<1x1x8x32xf32>,
    %321 = arith.addf %298, %317 : vector<8x32xf32>
    %322 = arith.mulf %317, %317 : vector<8x32xf32>
    %323 = arith.addf %300, %322 : vector<8x32xf32>
    %324 = tpu.concatenate %18, %20 in 0 : vector<4x34xbf16>, vector<4x34xbf16> -> vector<8x34xbf16>
    %cst_289 = arith.constant 0.000000e+00 : f32
    %325 = vector.broadcast %cst_289 : f32 to vector<8x32xf32>
    %c1_290 = arith.constant 1 : index
    %c0_291 = arith.constant 0 : index
    %c0_292 = arith.constant 0 : index
    %c0_293 = arith.constant 0 : index
    %326 = vector.load %arg4[%c1_290, %c0_291, %c0_292, %c0_293] : memref<2x3x8x8xbf16, #tpu.memory_space<vmem>>, vector<1x1x8x8xbf16>
    %327 = vector.shape_cast %326 : vector<1x1x8x8xbf16> to vector<8x8xbf16>
    %328 = vector.extract_strided_slice %324 {offsets = [0, 0], sizes = [8, 32], strides = [1, 1]} : vector<8x34xbf16> to vector<8x32xbf16>
    %cst_294 = arith.constant dense<0.000000e+00> : vector<8x32xf32>
    %329 = tpu.matmul %327, %328, %cst_294 {dimension_numbers = #tpu.dot_dimension_numbers<[1], [0], [0], [1], [0, 0, 1, 1], [], []>} : vector<8x8xbf16>, vector<8x32xbf16>, vector<8x32xf32> -> vector<8x32xf32>
    %330 = arith.addf %325, %329 : vector<8x32xf32>
    %c1_295 = arith.constant 1 : index
    %c1_296 = arith.constant 1 : index
    %c0_297 = arith.constant 0 : index
    %c0_298 = arith.constant 0 : index
    %331 = vector.load %arg4[%c1_295, %c1_296, %c0_297, %c0_298] : memref<2x3x8x8xbf16, #tpu.memory_space<vmem>>, vector<1x1x8x8xbf16>
    %332 = vector.shape_cast %331 : vector<1x1x8x8xbf16> to vector<8x8xbf16>
    %333 = vector.extract_strided_slice %324 {offsets = [0, 1], sizes = [8, 32], strides = [1, 1]} : vector<8x34xbf16> to vector<8x32xbf16>
    %cst_299 = arith.constant dense<0.000000e+00> : vector<8x32xf32>
    %334 = tpu.matmul %332, %333, %cst_299 {dimension_numbers = #tpu.dot_dimension_numbers<[1], [0], [0], [1], [0, 0, 1, 1], [], []>} : vector<8x8xbf16>, vector<8x32xbf16>, vector<8x32xf32> -> vector<8x32xf32>
    %335 = arith.addf %330, %334 : vector<8x32xf32>
    %c1_300 = arith.constant 1 : index
    %c2_301 = arith.constant 2 : index
    %c0_302 = arith.constant 0 : index
    %c0_303 = arith.constant 0 : index
    %336 = vector.load %arg4[%c1_300, %c2_301, %c0_302, %c0_303] : memref<2x3x8x8xbf16, #tpu.memory_space<vmem>>, vector<1x1x8x8xbf16>
    %337 = vector.shape_cast %336 : vector<1x1x8x8xbf16> to vector<8x8xbf16>
    %338 = vector.extract_strided_slice %324 {offsets = [0, 2], sizes = [8, 32], strides = [1, 1]} : vector<8x34xbf16> to vector<8x32xbf16>
    %cst_304 = arith.constant dense<0.000000e+00> : vector<8x32xf32>
    %339 = tpu.matmul %337, %338, %cst_304 {dimension_numbers = #tpu.dot_dimension_numbers<[1], [0], [0], [1], [0, 0, 1, 1], [], []>} : vector<8x8xbf16>, vector<8x32xbf16>, vector<8x32xf32> -> vector<8x32xf32>
    %340 = arith.addf %335, %339 : vector<8x32xf32>
    %c0_305 = arith.constant 0 : index
    %c13 = arith.constant 13 : index
    %c0_306 = arith.constant 0 : index
    %c0_307 = arith.constant 0 : index
    %341 = vector.load %arg5[%c0_305, %c13, %c0_306, %c0_307] : memref<1x16x8x32xf32, #tpu.memory_space<vmem>>, vector<1x1x8x32xf32>
    %342 = vector.shape_cast %341 : vector<1x1x8x32xf32> to vector<8x32xf32>
    %343 = vector.shape_cast %340 : vector<8x32xf32> to vector<1x1x8x32xf32>
    tpu.vector_store %arg5[%c0_305, %c13, %c0_306, %c0_307], %343 {strides = array<i32>} : memref<1x16x8x32xf32, #tpu.memory_space<vmem>>, vector<1x1x8x32xf32>,
    %344 = arith.addf %321, %340 : vector<8x32xf32>
    %345 = arith.mulf %340, %340 : vector<8x32xf32>
    %346 = arith.addf %323, %345 : vector<8x32xf32>
    %347 = tpu.concatenate %18, %20 in 0 : vector<4x34xbf16>, vector<4x34xbf16> -> vector<8x34xbf16>
    %cst_308 = arith.constant 0.000000e+00 : f32
    %348 = vector.broadcast %cst_308 : f32 to vector<8x32xf32>
    %c0_309 = arith.constant 0 : index
    %c0_310 = arith.constant 0 : index
    %c0_311 = arith.constant 0 : index
    %c0_312 = arith.constant 0 : index
    %349 = vector.load %arg4[%c0_309, %c0_310, %c0_311, %c0_312] : memref<2x3x8x8xbf16, #tpu.memory_space<vmem>>, vector<1x1x8x8xbf16>
    %350 = vector.shape_cast %349 : vector<1x1x8x8xbf16> to vector<8x8xbf16>
    %351 = vector.extract_strided_slice %347 {offsets = [0, 0], sizes = [8, 32], strides = [1, 1]} : vector<8x34xbf16> to vector<8x32xbf16>
    %cst_313 = arith.constant dense<0.000000e+00> : vector<8x32xf32>
    %352 = tpu.matmul %350, %351, %cst_313 {dimension_numbers = #tpu.dot_dimension_numbers<[1], [0], [0], [1], [0, 0, 1, 1], [], []>} : vector<8x8xbf16>, vector<8x32xbf16>, vector<8x32xf32> -> vector<8x32xf32>
    %353 = arith.addf %348, %352 : vector<8x32xf32>
    %c0_314 = arith.constant 0 : index
    %c1_315 = arith.constant 1 : index
    %c0_316 = arith.constant 0 : index
    %c0_317 = arith.constant 0 : index
    %354 = vector.load %arg4[%c0_314, %c1_315, %c0_316, %c0_317] : memref<2x3x8x8xbf16, #tpu.memory_space<vmem>>, vector<1x1x8x8xbf16>
    %355 = vector.shape_cast %354 : vector<1x1x8x8xbf16> to vector<8x8xbf16>
    %356 = vector.extract_strided_slice %347 {offsets = [0, 1], sizes = [8, 32], strides = [1, 1]} : vector<8x34xbf16> to vector<8x32xbf16>
    %cst_318 = arith.constant dense<0.000000e+00> : vector<8x32xf32>
    %357 = tpu.matmul %355, %356, %cst_318 {dimension_numbers = #tpu.dot_dimension_numbers<[1], [0], [0], [1], [0, 0, 1, 1], [], []>} : vector<8x8xbf16>, vector<8x32xbf16>, vector<8x32xf32> -> vector<8x32xf32>
    %358 = arith.addf %353, %357 : vector<8x32xf32>
    %c0_319 = arith.constant 0 : index
    %c2_320 = arith.constant 2 : index
    %c0_321 = arith.constant 0 : index
    %c0_322 = arith.constant 0 : index
    %359 = vector.load %arg4[%c0_319, %c2_320, %c0_321, %c0_322] : memref<2x3x8x8xbf16, #tpu.memory_space<vmem>>, vector<1x1x8x8xbf16>
    %360 = vector.shape_cast %359 : vector<1x1x8x8xbf16> to vector<8x8xbf16>
    %361 = vector.extract_strided_slice %347 {offsets = [0, 2], sizes = [8, 32], strides = [1, 1]} : vector<8x34xbf16> to vector<8x32xbf16>
    %cst_323 = arith.constant dense<0.000000e+00> : vector<8x32xf32>
    %362 = tpu.matmul %360, %361, %cst_323 {dimension_numbers = #tpu.dot_dimension_numbers<[1], [0], [0], [1], [0, 0, 1, 1], [], []>} : vector<8x8xbf16>, vector<8x32xbf16>, vector<8x32xf32> -> vector<8x32xf32>
    %363 = arith.addf %358, %362 : vector<8x32xf32>
    %c0_324 = arith.constant 0 : index
    %c14 = arith.constant 14 : index
    %c0_325 = arith.constant 0 : index
    %c0_326 = arith.constant 0 : index
    %364 = vector.load %arg5[%c0_324, %c14, %c0_325, %c0_326] : memref<1x16x8x32xf32, #tpu.memory_space<vmem>>, vector<1x1x8x32xf32>
    %365 = vector.shape_cast %364 : vector<1x1x8x32xf32> to vector<8x32xf32>
    %366 = vector.shape_cast %363 : vector<8x32xf32> to vector<1x1x8x32xf32>
    tpu.vector_store %arg5[%c0_324, %c14, %c0_325, %c0_326], %366 {strides = array<i32>} : memref<1x16x8x32xf32, #tpu.memory_space<vmem>>, vector<1x1x8x32xf32>,
    %367 = arith.addf %344, %363 : vector<8x32xf32>
    %368 = arith.mulf %363, %363 : vector<8x32xf32>
    %369 = arith.addf %346, %368 : vector<8x32xf32>
    %370 = tpu.concatenate %20, %22 in 0 : vector<4x34xbf16>, vector<4x34xbf16> -> vector<8x34xbf16>
    %cst_327 = arith.constant 0.000000e+00 : f32
    %371 = vector.broadcast %cst_327 : f32 to vector<8x32xf32>
    %c1_328 = arith.constant 1 : index
    %c0_329 = arith.constant 0 : index
    %c0_330 = arith.constant 0 : index
    %c0_331 = arith.constant 0 : index
    %372 = vector.load %arg4[%c1_328, %c0_329, %c0_330, %c0_331] : memref<2x3x8x8xbf16, #tpu.memory_space<vmem>>, vector<1x1x8x8xbf16>
    %373 = vector.shape_cast %372 : vector<1x1x8x8xbf16> to vector<8x8xbf16>
    %374 = vector.extract_strided_slice %370 {offsets = [0, 0], sizes = [8, 32], strides = [1, 1]} : vector<8x34xbf16> to vector<8x32xbf16>
    %cst_332 = arith.constant dense<0.000000e+00> : vector<8x32xf32>
    %375 = tpu.matmul %373, %374, %cst_332 {dimension_numbers = #tpu.dot_dimension_numbers<[1], [0], [0], [1], [0, 0, 1, 1], [], []>} : vector<8x8xbf16>, vector<8x32xbf16>, vector<8x32xf32> -> vector<8x32xf32>
    %376 = arith.addf %371, %375 : vector<8x32xf32>
    %c1_333 = arith.constant 1 : index
    %c1_334 = arith.constant 1 : index
    %c0_335 = arith.constant 0 : index
    %c0_336 = arith.constant 0 : index
    %377 = vector.load %arg4[%c1_333, %c1_334, %c0_335, %c0_336] : memref<2x3x8x8xbf16, #tpu.memory_space<vmem>>, vector<1x1x8x8xbf16>
    %378 = vector.shape_cast %377 : vector<1x1x8x8xbf16> to vector<8x8xbf16>
    %379 = vector.extract_strided_slice %370 {offsets = [0, 1], sizes = [8, 32], strides = [1, 1]} : vector<8x34xbf16> to vector<8x32xbf16>
    %cst_337 = arith.constant dense<0.000000e+00> : vector<8x32xf32>
    %380 = tpu.matmul %378, %379, %cst_337 {dimension_numbers = #tpu.dot_dimension_numbers<[1], [0], [0], [1], [0, 0, 1, 1], [], []>} : vector<8x8xbf16>, vector<8x32xbf16>, vector<8x32xf32> -> vector<8x32xf32>
    %381 = arith.addf %376, %380 : vector<8x32xf32>
    %c1_338 = arith.constant 1 : index
    %c2_339 = arith.constant 2 : index
    %c0_340 = arith.constant 0 : index
    %c0_341 = arith.constant 0 : index
    %382 = vector.load %arg4[%c1_338, %c2_339, %c0_340, %c0_341] : memref<2x3x8x8xbf16, #tpu.memory_space<vmem>>, vector<1x1x8x8xbf16>
    %383 = vector.shape_cast %382 : vector<1x1x8x8xbf16> to vector<8x8xbf16>
    %384 = vector.extract_strided_slice %370 {offsets = [0, 2], sizes = [8, 32], strides = [1, 1]} : vector<8x34xbf16> to vector<8x32xbf16>
    %cst_342 = arith.constant dense<0.000000e+00> : vector<8x32xf32>
    %385 = tpu.matmul %383, %384, %cst_342 {dimension_numbers = #tpu.dot_dimension_numbers<[1], [0], [0], [1], [0, 0, 1, 1], [], []>} : vector<8x8xbf16>, vector<8x32xbf16>, vector<8x32xf32> -> vector<8x32xf32>
    %386 = arith.addf %381, %385 : vector<8x32xf32>
    %c0_343 = arith.constant 0 : index
    %c15 = arith.constant 15 : index
    %c0_344 = arith.constant 0 : index
    %c0_345 = arith.constant 0 : index
    %387 = vector.load %arg5[%c0_343, %c15, %c0_344, %c0_345] : memref<1x16x8x32xf32, #tpu.memory_space<vmem>>, vector<1x1x8x32xf32>
    %388 = vector.shape_cast %387 : vector<1x1x8x32xf32> to vector<8x32xf32>
    %389 = vector.shape_cast %386 : vector<8x32xf32> to vector<1x1x8x32xf32>
    tpu.vector_store %arg5[%c0_343, %c15, %c0_344, %c0_345], %389 {strides = array<i32>} : memref<1x16x8x32xf32, #tpu.memory_space<vmem>>, vector<1x1x8x32xf32>,
    %390 = arith.addf %367, %386 : vector<8x32xf32>
    %391 = arith.mulf %386, %386 : vector<8x32xf32>
    %392 = arith.addf %369, %391 : vector<8x32xf32>
    %c0_346 = arith.constant 0 : index
    %c0_347 = arith.constant 0 : index
    %c0_348 = arith.constant 0 : index
    %c0_349 = arith.constant 0 : index
    %393 = vector.load %arg6[%c0_346, %c0_347, %c0_348, %c0_349] : memref<1x2x8x32xf32, #tpu.memory_space<vmem>>, vector<1x1x8x32xf32>
    %394 = vector.shape_cast %393 : vector<1x1x8x32xf32> to vector<8x32xf32>
    %395 = arith.addf %394, %390 : vector<8x32xf32>
    %c0_350 = arith.constant 0 : index
    %c0_351 = arith.constant 0 : index
    %c0_352 = arith.constant 0 : index
    %c0_353 = arith.constant 0 : index
    %396 = vector.load %arg6[%c0_350, %c0_351, %c0_352, %c0_353] : memref<1x2x8x32xf32, #tpu.memory_space<vmem>>, vector<1x1x8x32xf32>
    %397 = vector.shape_cast %396 : vector<1x1x8x32xf32> to vector<8x32xf32>
    %398 = vector.shape_cast %395 : vector<8x32xf32> to vector<1x1x8x32xf32>
    tpu.vector_store %arg6[%c0_350, %c0_351, %c0_352, %c0_353], %398 {strides = array<i32>} : memref<1x2x8x32xf32, #tpu.memory_space<vmem>>, vector<1x1x8x32xf32>,
    %c0_354 = arith.constant 0 : index
    %c1_355 = arith.constant 1 : index
    %c0_356 = arith.constant 0 : index
    %c0_357 = arith.constant 0 : index
    %399 = vector.load %arg6[%c0_354, %c1_355, %c0_356, %c0_357] : memref<1x2x8x32xf32, #tpu.memory_space<vmem>>, vector<1x1x8x32xf32>
    %400 = vector.shape_cast %399 : vector<1x1x8x32xf32> to vector<8x32xf32>
    %401 = arith.addf %400, %392 : vector<8x32xf32>
    %c0_358 = arith.constant 0 : index
    %c1_359 = arith.constant 1 : index
    %c0_360 = arith.constant 0 : index
    %c0_361 = arith.constant 0 : index
    %402 = vector.load %arg6[%c0_358, %c1_359, %c0_360, %c0_361] : memref<1x2x8x32xf32, #tpu.memory_space<vmem>>, vector<1x1x8x32xf32>
    %403 = vector.shape_cast %402 : vector<1x1x8x32xf32> to vector<8x32xf32>
    %404 = vector.shape_cast %401 : vector<8x32xf32> to vector<1x1x8x32xf32>
    tpu.vector_store %arg6[%c0_358, %c1_359, %c0_360, %c0_361], %404 {strides = array<i32>} : memref<1x2x8x32xf32, #tpu.memory_space<vmem>>, vector<1x1x8x32xf32>,
    return
  }
  func.func @transform_0(%arg0: i32, %arg1: i32) -> (i32, i32, i32, i32) {
    %c0_i32 = arith.constant 0 : i32
    %c0_i32_0 = arith.constant 0 : i32
    %c0_i32_1 = arith.constant 0 : i32
    return %arg0, %arg1, %c0_i32, %c0_i32_0 : i32, i32, i32, i32
  }
  func.func @transform_1(%arg0: i32, %arg1: i32) -> (i32, i32, i32, i32) {
    %c1_i32 = arith.constant 1 : i32
    %0 = arith.addi %arg1, %c1_i32 : i32
    %c0_i32 = arith.constant 0 : i32
    %c0_i32_0 = arith.constant 0 : i32
    %c0_i32_1 = arith.constant 0 : i32
    return %arg0, %0, %c0_i32, %c0_i32_0 : i32, i32, i32, i32
  }
  func.func @transform_2(%arg0: i32, %arg1: i32) -> (i32, i32, i32, i32) {
    %c0_i32 = arith.constant 0 : i32
    %c0_i32_0 = arith.constant 0 : i32
    %c0_i32_1 = arith.constant 0 : i32
    %c0_i32_2 = arith.constant 0 : i32
    %c0_i32_3 = arith.constant 0 : i32
    return %c0_i32, %c0_i32_0, %c0_i32_1, %c0_i32_2 : i32, i32, i32, i32
  }
  func.func @transform_3(%arg0: i32, %arg1: i32) -> (i32, i32, i32, i32) {
    %c0_i32 = arith.constant 0 : i32
    %c0_i32_0 = arith.constant 0 : i32
    %c0_i32_1 = arith.constant 0 : i32
    return %arg0, %arg1, %c0_i32, %c0_i32_0 : i32, i32, i32, i32
  }
  func.func @transform_4(%arg0: i32, %arg1: i32) -> (i32, i32, i32, i32) {
    %c0_i32 = arith.constant 0 : i32
    %c0_i32_0 = arith.constant 0 : i32
    %c0_i32_1 = arith.constant 0 : i32
    %c0_i32_2 = arith.constant 0 : i32
    return %arg0, %c0_i32, %c0_i32_0, %c0_i32_1 : i32, i32, i32, i32
  }
}

module attributes {stable_mosaic.version = 11 : i64} {
  func.func @bn_relu_nchw_kernel(%arg0: i32, %arg1: i32, %arg2: memref<1x16x8x32xf32, #tpu.memory_space<vmem>>, %arg3: memref<8x1xf32, #tpu.memory_space<vmem>>, %arg4: memref<8x1xf32, #tpu.memory_space<vmem>>, %arg5: memref<1x8x16x32xf32, #tpu.memory_space<vmem>>) attributes {dimension_semantics = [#tpu.dimension_semantics<parallel>, #tpu.dimension_semantics<parallel>], iteration_bounds = array<i64: 2, 2>, scalar_prefetch = 0 : i64, scratch_operands = 0 : i64, tpu.core_type = #tpu.core_type<tc>, window_params = [{transform_indices = @transform_0, window_bounds = array<i64: 1, 16, 8, 32>}, {pipeline_mode = #tpu.pipeline_mode<synchronous>, transform_indices = @transform_1, window_bounds = array<i64: 8, 1>}, {pipeline_mode = #tpu.pipeline_mode<synchronous>, transform_indices = @transform_2, window_bounds = array<i64: 8, 1>}, {transform_indices = @transform_3, window_bounds = array<i64: 1, 8, 16, 32>}]} {
    %c0 = arith.constant 0 : index
    %c0_0 = arith.constant 0 : index
    %c0_1 = arith.constant 0 : index
    %c0_2 = arith.constant 0 : index
    %0 = vector.load %arg2[%c0, %c0_0, %c0_1, %c0_2] : memref<1x16x8x32xf32, #tpu.memory_space<vmem>>, vector<1x16x8x32xf32>
    %1 = vector.shape_cast %0 : vector<1x16x8x32xf32> to vector<16x8x32xf32>
    %c0_3 = arith.constant 0 : index
    %c0_4 = arith.constant 0 : index
    %2 = vector.load %arg3[%c0_3, %c0_4] : memref<8x1xf32, #tpu.memory_space<vmem>>, vector<8x1xf32>
    %3 = vector.shape_cast %2 : vector<8x1xf32> to vector<1x8x1xf32>
    %4 = vector.broadcast %3 : vector<1x8x1xf32> to vector<16x8x32xf32>
    %5 = arith.mulf %1, %4 : vector<16x8x32xf32>
    %c0_5 = arith.constant 0 : index
    %c0_6 = arith.constant 0 : index
    %6 = vector.load %arg4[%c0_5, %c0_6] : memref<8x1xf32, #tpu.memory_space<vmem>>, vector<8x1xf32>
    %7 = vector.shape_cast %6 : vector<8x1xf32> to vector<1x8x1xf32>
    %8 = vector.broadcast %7 : vector<1x8x1xf32> to vector<16x8x32xf32>
    %9 = arith.addf %5, %8 : vector<16x8x32xf32>
    %cst = arith.constant 0.000000e+00 : f32
    %10 = vector.broadcast %cst : f32 to vector<16x8x32xf32>
    %11 = arith.maximumf %9, %10 : vector<16x8x32xf32>
    %12 = tpu.transpose %11, [1, 0, 2] : vector<16x8x32xf32> -> vector<8x16x32xf32>
    %c0_7 = arith.constant 0 : index
    %c0_8 = arith.constant 0 : index
    %c0_9 = arith.constant 0 : index
    %c0_10 = arith.constant 0 : index
    %13 = vector.load %arg5[%c0_7, %c0_8, %c0_9, %c0_10] : memref<1x8x16x32xf32, #tpu.memory_space<vmem>>, vector<1x8x16x32xf32>
    %14 = vector.shape_cast %13 : vector<1x8x16x32xf32> to vector<8x16x32xf32>
    %15 = vector.shape_cast %12 : vector<8x16x32xf32> to vector<1x8x16x32xf32>
    tpu.vector_store %arg5[%c0_7, %c0_8, %c0_9, %c0_10], %15 {strides = array<i32>} : memref<1x8x16x32xf32, #tpu.memory_space<vmem>>, vector<1x8x16x32xf32>,
    return
  }
  func.func @transform_0(%arg0: i32, %arg1: i32) -> (i32, i32, i32, i32) {
    %c0_i32 = arith.constant 0 : i32
    %c0_i32_0 = arith.constant 0 : i32
    %c0_i32_1 = arith.constant 0 : i32
    return %arg0, %arg1, %c0_i32, %c0_i32_0 : i32, i32, i32, i32
  }
  func.func @transform_1(%arg0: i32, %arg1: i32) -> (i32, i32) {
    %c0_i32 = arith.constant 0 : i32
    %c0_i32_0 = arith.constant 0 : i32
    %c0_i32_1 = arith.constant 0 : i32
    return %c0_i32, %c0_i32_0 : i32, i32
  }
  func.func @transform_2(%arg0: i32, %arg1: i32) -> (i32, i32) {
    %c0_i32 = arith.constant 0 : i32
    %c0_i32_0 = arith.constant 0 : i32
    %c0_i32_1 = arith.constant 0 : i32
    return %c0_i32, %c0_i32_0 : i32, i32
  }
  func.func @transform_3(%arg0: i32, %arg1: i32) -> (i32, i32, i32, i32) {
    %c0_i32 = arith.constant 0 : i32
    %c0_i32_0 = arith.constant 0 : i32
    %c0_i32_1 = arith.constant 0 : i32
    return %arg0, %c0_i32, %arg1, %c0_i32_0 : i32, i32, i32, i32
  }
}

</mosaic_0001>

<bundles_post_ra>
// kernel: up_conv.3
= control target key start
LH: loop header
LB: loop body
LE: loop exit
PB: predicated region body
PF: predicated region fallthrough
CT: control target
= control target key end

     0   :  { %8 = vsyncpa [#allocation3], 0  ;;  %s1105_s0 = inlined_call_operand.vmem [shape: f32[2,32,8,32], index: 0, kind: input, shape index: {}]   ;;  %s1106_s1 = inlined_call_operand.vmem [shape: f32[8,1], index: 1, kind: input, shape index: {}]   ;;  %s1107_s2 = inlined_call_operand.vmem [shape: f32[8,1], index: 2, kind: input, shape index: {}]   ;;  %s1108_s3 = inlined_call_operand.hbm [shape: f32[2,8,32,32], index: 3, kind: output, shape index: {}]  }
   0x1   :  { %10 = vsyncpa [#allocation3 + $0x1], 0  ;;  %s887_s12 = smov 0   ;;  %s889_s13 = smov 0  }
   0x2   :  { %s891_s14 = smov 0   ;;  %s893_s15 = smov 0  }
   0x3   :  { %s895_s16 = smov 0   ;;  %s897_s17 = smov 0  }
   0x4   :  { %s899_s18 = smov 0   ;;  %s901_s19 = smov 0  }
   0x5 LB: > { %s686_s20 = sadd.s32 4294967295, %s855_s19   ;;  %s687_s21 = sadd.s32 4294967294, %s855_s19   ;;  %s855_s19 = sphi %s901_s19, %s16_s19   ;;  %s851_s18 = sphi %s899_s18, %s1117_s18   ;;  %s847_s17 = sphi %s897_s17, %s1116_s17   ;;  %s843_s16 = sphi %s895_s16, %s1115_s16   ;;  %s839_s15 = sphi %s893_s15, %s1114_s15   ;;  %s835_s14 = sphi %s891_s14, %s1113_s14   ;;  %s831_s13 = sphi %s889_s13, %s1112_s13   ;;  %s827_s12 = sphi %s887_s12, %s1111_s12  }
   0x6   : > { %s25_s22 = sadd.s32 1, %s847_s17  ;;  %s28_s23 = sadd.s32 1, %s851_s18 }
   0x7   : > { %p26_p0 = scmp.ge.s32.totalorder %s25_s22, 2  ;;  %p117_p1 = scmp.ne.s32.totalorder %s835_s14, %s831_s13 }
   0x8   : > { %p118_p2 = scmp.eq.s32.totalorder %s686_s20, 3  ;;  %p123_p5 = scmp.ne.s32.totalorder %s831_s13, %s827_s12 }
   0x9   : > { %s1119_s22 = smov (%p26_p0, %s25_s22), 0  ;;  %s1121_s23 = smov (!%p26_p0, %s28_s23), %s851_s18 }
   0xa   : > { %s103_s24 = ssub.s32 %s847_s17, %s1119_s22  ;;  %p938_p3 = por %p118_p2, %p117_p1 }
   0xb   : > { %p30_p4 = scmp.ge.s32.totalorder %s1121_s23, 2  ;;  %p124_p6 = scmp.eq.s32.totalorder %s687_s21, 3 }
   0xc   : > { %p690_p7 = scmp.ge.s32.totalorder %s855_s19, 1  ;;  %p161_p9 = scmp.lt.s32.totalorder %s855_s19, 5 }
   0xd   : > { %s1123_s23 = smov (%p30_p4, %s1121_s23), 0  ;;  %p947_p8 = por %p124_p6, %p123_p5 }
   0xe   : > { %s102_s27 = ssub.s32 %s851_s18, %s1123_s23  ;;  %s107_s28 = sadd.s32 1, %s835_s14 }
   0xf   : > { %s104_s29 = sor.u32 %s103_s24, %s102_s27  ;;  %p162_p10 = pnand %p690_p7, %p161_p9 }
  0x10   : > { %p105_p11 = scmp.eq.s32.totalorder %s104_s29, 0  ;;  %s186_s8 = sand.u32 (!%p162_p10), 1, %s831_s13  }
  0x11   : > { %165 = sbr.rel (%p162_p10) target bundleno = 198 (0xc6), region = 32  ;;  %s692_s9 = sshll.u32 (!%p162_p10), %s839_s15, 4 }
  0x12   : > { %s956_s30 = scalar_select %p105_p11, %s835_s14, %s107_s28  }
  0x13   : > { %p190_p12 = scmp.lt.s32.totalorder (!%p162_p10), %s843_s16, 1  ;;  %p192_p13 = scmp.lt.s32.totalorder (!%p162_p10), %s692_s9, 31 }
  0x14   : > { %s691_s29 = sshll.u32 (!%p162_p10), %s186_s8, 7  ;;  %s566_s5 = scalar_lea.sflag (!%p162_p10), [#allocation3], %s186_s8 }
  0x15   : > { %s1009_s4 = scalar_lea.vmem (!%p162_p10), [#allocation2], %s691_s29 }
  0x16   : > { %v216_v0 = vld [vmem:[%s1106_s1] sm:$0xff]  ;;  %v857_v1 = vmov 0   ;;  %s191_s10 = scalar_select %p190_p12, %s843_s16, 1  ;;  %v858_v3 = vmov 1983009808   ;;  %v281_v5 = vlaneseq  ;;  %vm548_vm0 = vcmask 261120  }
  0x17   : > { %788 = vset.pattern.permute.xlu0 %v857_v1  ;;  %v238_v2 = vld [vmem:[%s1107_s2] sm:$0xff]  ;;  %s1125_s9 = smov (!%p192_p13, %s692_s9), 31  ;;  %v279_v4 = vunpack.c.l.s4 %v858_v3  ;;  %v859_v6 = vmov 1934713408  }
  0x18   : > { %219 = vperm.xlu0 %788, %v216_v0   ;;  %s693_s11 = sshll.u32 %s191_s10, 5  ;;  %v343_v7 = vunpack.c.l.s4 %v859_v6  ;;  %v282_v9 = vshrl.u32 %v281_v5, 7 }
  0x19   : > { %s195_s20 = sadd.s32 %s693_s11, %s1125_s9  ;;  %v280_v8 = vunpack.c.0.s8 %v279_v4 }
  0x1a   : > { %s694_s21 = sshll.u32 %s195_s20, 3  ;;  %v344_v10 = vunpack.c.0.s8 %v343_v7 }
  0x1b   : > { %s197_s28 = scalar_lea.vmem %s1105_s0, %s694_s21  ;;  %v971_v22 = vsub.s32 %v280_v8, %v282_v9 }
  0x1c   : > { %241 = vperm.xlu0 %788, %v238_v2   ;;  %v200_v11 = vld [vmem:[%s197_s28] sm:$0xff]  ;;  %v201_v12 = vld [vmem:[%s197_s28 + $0x8] sm:$0xff]  ;;  %v202_v13 = vld [vmem:[%s197_s28 + $0x10] sm:$0xff]  ;;  %v973_v23 = vsub.s32 %v344_v10, %v282_v9 }
  0x1d   : > { %v203_v14 = vld [vmem:[%s197_s28 + $0x18] sm:$0xff]  ;;  %v204_v15 = vld [vmem:[%s197_s28 + $0x20] sm:$0xff]  ;;  %v205_v16 = vld [vmem:[%s197_s28 + $0x28] sm:$0xff] }
  0x1e   : > { %v206_v17 = vld [vmem:[%s197_s28 + $0x30] sm:$0xff]  ;;  %v207_v18 = vld [vmem:[%s197_s28 + $0x38] sm:$0xff]  ;;  %v208_v19 = vld [vmem:[%s197_s28 + $0x40] sm:$0xff] }
  0x1f   : > { %v209_v20 = vld [vmem:[%s197_s28 + $0x48] sm:$0xff]  ;;  %v210_v24 = vld [vmem:[%s197_s28 + $0x50] sm:$0xff]  ;;  %v211_v25 = vld [vmem:[%s197_s28 + $0x58] sm:$0xff] }
  0x20   : > { %v212_v26 = vld [vmem:[%s197_s28 + $0x60] sm:$0xff]  ;;  %v213_v27 = vld [vmem:[%s197_s28 + $0x68] sm:$0xff]  ;;  %v214_v28 = vld [vmem:[%s197_s28 + $0x70] sm:$0xff] }
  0x21   : > { %v215_v29 = vld [vmem:[%s197_s28 + $0x78] sm:$0xff] }
  0x93   : > { %v220_v21 = vpop.permute.xlu0 %219 }
  0x94   : > { %v222_v30 = vmul.f32 %v220_v21, %v200_v11  ;;  %v223_v31 = vmul.f32 %v220_v21, %v201_v12  ;;  %v224_v32 = vmul.f32 %v220_v21, %v202_v13  ;;  %v225_v33 = vmul.f32 %v220_v21, %v203_v14 }
  0x95   : > { %v226_v34 = vmul.f32 %v220_v21, %v204_v15  ;;  %v227_v35 = vmul.f32 %v220_v21, %v205_v16  ;;  %v228_v36 = vmul.f32 %v220_v21, %v206_v17  ;;  %v229_v37 = vmul.f32 %v220_v21, %v207_v18 }
  0x96   : > { %v230_v38 = vmul.f32 %v220_v21, %v208_v19  ;;  %v231_v39 = vmul.f32 %v220_v21, %v209_v20  ;;  %v232_v40 = vmul.f32 %v220_v21, %v210_v24  ;;  %v233_v41 = vmul.f32 %v220_v21, %v211_v25 }
  0x97   : > { %v242_v42 = vpop.permute.xlu0 %241  ;;  %v234_v43 = vmul.f32 %v220_v21, %v212_v26  ;;  %v235_v44 = vmul.f32 %v220_v21, %v213_v27  ;;  %v236_v45 = vmul.f32 %v220_v21, %v214_v28  ;;  %v237_v46 = vmul.f32 %v220_v21, %v215_v29 }
  0x98   : > { %v244_v47 = vadd.f32 %v242_v42, %v222_v30  ;;  %v245_v48 = vadd.f32 %v242_v42, %v223_v31  ;;  %v246_v49 = vadd.f32 %v242_v42, %v224_v32  ;;  %v247_v50 = vadd.f32 %v242_v42, %v225_v33 }
  0x99   : > { %v248_v51 = vadd.f32 %v242_v42, %v226_v34  ;;  %v249_v52 = vadd.f32 %v242_v42, %v227_v35  ;;  %v250_v53 = vadd.f32 %v242_v42, %v228_v36  ;;  %v251_v54 = vadd.f32 %v242_v42, %v229_v37 }
  0x9a   : > { %v252_v55 = vadd.f32 %v242_v42, %v230_v38  ;;  %v253_v56 = vadd.f32 %v242_v42, %v231_v39  ;;  %v254_v57 = vadd.f32 %v242_v42, %v232_v40  ;;  %v255_v58 = vadd.f32 %v242_v42, %v233_v41 }
  0x9b   : > { %v975_v59 = vadd.f32 %v242_v42, %v234_v43  ;;  %v977_v60 = vadd.f32 %v242_v42, %v235_v44  ;;  %v979_v61 = vadd.f32 %v242_v42, %v236_v45  ;;  %v981_v62 = vadd.f32 %v242_v42, %v237_v46 }
  0x9c   : > { %v260_v63 = vmax.f32 %v244_v47, 0.0  ;;  %v261_v0 = vmax.f32 %v245_v48, 0.0  ;;  %v262_v1 = vmax.f32 %v246_v49, 0.0  ;;  %v263_v2 = vmax.f32 %v247_v50, 0.0 }
  0x9d   : > { %v264_v3 = vmax.f32 %v248_v51, 0.0  ;;  %v265_v4 = vmax.f32 %v249_v52, 0.0  ;;  %v266_v5 = vmax.f32 %v250_v53, 0.0  ;;  %v267_v6 = vmax.f32 %v251_v54, 0.0 }
  0x9e   : > { %v268_v7 = vmax.f32 %v252_v55, 0.0  ;;  %v269_v8 = vmax.f32 %v253_v56, 0.0  ;;  %v270_v9 = vmax.f32 %v254_v57, 0.0  ;;  %v271_v10 = vmax.f32 %v255_v58, 0.0 }
  0x9f   : > { %v272_v11 = vmax.f32 %v975_v59, 0.0  ;;  %v273_v12 = vmax.f32 %v977_v60, 0.0  ;;  %v274_v13 = vmax.f32 %v979_v61, 0.0  ;;  %v275_v14 = vmax.f32 %v981_v62, 0.0 }
  0xa0   : > { %v276_v15 = vcombine.low %v260_v63, %v262_v1  ;;  %v277_v16 = vcombine.high %v260_v63, %v262_v1  ;;  %v292_v17 = vcombine.low %v261_v0, %v263_v2  ;;  %v293_v18 = vcombine.high %v261_v0, %v263_v2 }
  0xa1   : > { %v308_v19 = vcombine.low %v264_v3, %v266_v5  ;;  %v309_v20 = vcombine.high %v264_v3, %v266_v5  ;;  %v324_v21 = vcombine.low %v265_v4, %v267_v6  ;;  %v325_v24 = vcombine.high %v265_v4, %v267_v6 }
  0xa2   : > { %v284_v25 = vrot.slane %v276_v15, %v971_v22  ;;  %v291_v26 = vrot.slane %v277_v16, %v971_v22  ;;  %v300_v27 = vrot.slane %v292_v17, %v971_v22  ;;  %v307_v28 = vrot.slane %v293_v18, %v971_v22 }
  0xa3   : > { %v316_v29 = vrot.slane %v308_v19, %v971_v22  ;;  %v323_v30 = vrot.slane %v309_v20, %v971_v22  ;;  %v332_v31 = vrot.slane %v324_v21, %v971_v22  ;;  %v339_v32 = vrot.slane %v325_v24, %v971_v22 }
  0xa4   : > { %v340_v33 = vcombine.low %v284_v25, %v300_v27  ;;  %v341_v34 = vcombine.high %v284_v25, %v300_v27  ;;  %v356_v35 = vcombine.low %v291_v26, %v307_v28  ;;  %v357_v36 = vcombine.high %v291_v26, %v307_v28 }
  0xa5   : > { %v372_v37 = vcombine.low %v316_v29, %v332_v31  ;;  %v373_v38 = vcombine.high %v316_v29, %v332_v31  ;;  %v388_v39 = vcombine.low %v323_v30, %v339_v32  ;;  %v389_v40 = vcombine.high %v323_v30, %v339_v32 }
  0xa6   : > { %v348_v41 = vrot.slane %v340_v33, %v973_v23  ;;  %v355_v42 = vrot.slane %v341_v34, %v973_v23  ;;  %v364_v43 = vrot.slane %v356_v35, %v973_v23  ;;  %v371_v44 = vrot.slane %v357_v36, %v973_v23 }
  0xa7   : > { %v380_v45 = vrot.slane %v372_v37, %v973_v23  ;;  %v387_v46 = vrot.slane %v373_v38, %v973_v23  ;;  %v396_v47 = vrot.slane %v388_v39, %v973_v23  ;;  %v403_v48 = vrot.slane %v389_v40, %v973_v23 }
  0xa8   : > { %v412_v49 = vcombine.low %v268_v7, %v270_v9  ;;  %v413_v50 = vcombine.high %v268_v7, %v270_v9  ;;  %v428_v51 = vcombine.low %v269_v8, %v271_v10  ;;  %v429_v52 = vcombine.high %v269_v8, %v271_v10 }
  0xa9   : > { %v404_v53 = vcombine.low %v348_v41, %v380_v45  ;;  %v405_v54 = vcombine.high %v348_v41, %v380_v45  ;;  %v406_v55 = vcombine.low %v355_v42, %v387_v46  ;;  %v407_v56 = vcombine.high %v355_v42, %v387_v46 }
  0xaa   : > { %v408_v57 = vcombine.low %v364_v43, %v396_v47  ;;  %v409_v58 = vcombine.high %v364_v43, %v396_v47  ;;  %v410_v59 = vcombine.low %v371_v44, %v403_v48  ;;  %v411_v60 = vcombine.high %v371_v44, %v403_v48 }
  0xab   : > { %v420_v61 = vrot.slane %v412_v49, %v971_v22  ;;  %v427_v62 = vrot.slane %v413_v50, %v971_v22  ;;  %v436_v63 = vrot.slane %v428_v51, %v971_v22  ;;  %v443_v0 = vrot.slane %v429_v52, %v971_v22  ;;  %549 = vst.msk [vmem:[%s1009_s4] sm:$0xff] %vm548_vm0, %v404_v53 }
  0xac   : > { %551 = vst.msk [vmem:[%s1009_s4 + $0x10] sm:$0xff] %vm548_vm0, %v405_v54  ;;  %553 = vst.msk [vmem:[%s1009_s4 + $0x20] sm:$0xff] %vm548_vm0, %v406_v55  ;;  %v444_v1 = vcombine.low %v272_v11, %v274_v13  ;;  %v445_v2 = vcombine.high %v272_v11, %v274_v13  ;;  %v460_v3 = vcombine.low %v273_v12, %v275_v14 }
  0xad   : > { %555 = vst.msk [vmem:[%s1009_s4 + $0x30] sm:$0xff] %vm548_vm0, %v407_v56  ;;  %v461_v4 = vcombine.high %v273_v12, %v275_v14  ;;  %557 = vst.msk [vmem:[%s1009_s4 + $0x40] sm:$0xff] %vm548_vm0, %v408_v57  ;;  %v476_v5 = vcombine.low %v420_v61, %v436_v63  ;;  %v477_v6 = vcombine.high %v420_v61, %v436_v63 }
  0xae   : > { %559 = vst.msk [vmem:[%s1009_s4 + $0x50] sm:$0xff] %vm548_vm0, %v409_v58  ;;  %561 = vst.msk [vmem:[%s1009_s4 + $0x60] sm:$0xff] %vm548_vm0, %v410_v59  ;;  %v492_v7 = vcombine.low %v427_v62, %v443_v0  ;;  %v493_v8 = vcombine.high %v427_v62, %v443_v0  ;;  %v452_v9 = vrot.slane %v444_v1, %v971_v22 }
  0xaf   : > { %563 = vst.msk [vmem:[%s1009_s4 + $0x70] sm:$0xff] %vm548_vm0, %v411_v60  ;;  %v459_v10 = vrot.slane %v445_v2, %v971_v22  ;;  %v468_v11 = vrot.slane %v460_v3, %v971_v22  ;;  %v475_v12 = vrot.slane %v461_v4, %v971_v22  ;;  %v484_v13 = vrot.slane %v476_v5, %v973_v23 }
  0xb0   : > { %v491_v14 = vrot.slane %v477_v6, %v973_v23  ;;  %v500_v19 = vrot.slane %v492_v7, %v973_v23  ;;  %v507_v20 = vrot.slane %v493_v8, %v973_v23 }
  0xb1   : > { %v508_v15 = vcombine.low %v452_v9, %v468_v11  ;;  %v509_v16 = vcombine.high %v452_v9, %v468_v11  ;;  %v524_v17 = vcombine.low %v459_v10, %v475_v12  ;;  %v525_v18 = vcombine.high %v459_v10, %v475_v12 }
  0xb3   : > { %v516_v21 = vrot.slane %v508_v15, %v973_v23  ;;  %v523_v22 = vrot.slane %v509_v16, %v973_v23  ;;  %v532_v24 = vrot.slane %v524_v17, %v973_v23  ;;  %v539_v25 = vrot.slane %v525_v18, %v973_v23 }
  0xb5   : > { %v540_v26 = vcombine.low %v484_v13, %v516_v21  ;;  %v541_v27 = vcombine.high %v484_v13, %v516_v21  ;;  %v542_v28 = vcombine.low %v491_v14, %v523_v22  ;;  %v543_v29 = vcombine.high %v491_v14, %v523_v22 }
  0xb6   : > { %v544_v30 = vcombine.low %v500_v19, %v532_v24  ;;  %v545_v31 = vcombine.high %v500_v19, %v532_v24  ;;  %v546_v32 = vcombine.low %v507_v20, %v539_v25  ;;  %v547_v33 = vcombine.high %v507_v20, %v539_v25 }
  0xb7   : > { %550 = vst.msk [vmem:[%s1009_s4 + $0x8] sm:$0xff] %vm548_vm0, %v540_v26  ;;  %552 = vst.msk [vmem:[%s1009_s4 + $0x18] sm:$0xff] %vm548_vm0, %v541_v27 }
  0xb8   : > { %554 = vst.msk [vmem:[%s1009_s4 + $0x28] sm:$0xff] %vm548_vm0, %v542_v28  ;;  %556 = vst.msk [vmem:[%s1009_s4 + $0x38] sm:$0xff] %vm548_vm0, %v543_v29 }
  0xb9   : > { %558 = vst.msk [vmem:[%s1009_s4 + $0x48] sm:$0xff] %vm548_vm0, %v544_v30  ;;  %560 = vst.msk [vmem:[%s1009_s4 + $0x58] sm:$0xff] %vm548_vm0, %v545_v31 }
  0xba   : > { %562 = vst.msk [vmem:[%s1009_s4 + $0x68] sm:$0xff] %vm548_vm0, %v546_v32  ;;  %564 = vst.msk [vmem:[%s1009_s4 + $0x78] sm:$0xff] %vm548_vm0, %v547_v33 }
  0xbb   : > { %s696_s6 = sshll.u32 %s839_s15, 1  ;;  %s697_s7 = sshll.u32 %s843_s16, 5 }
  0xbc   : > { %s578_s9 = sadd.s32 %s697_s7, %s696_s6  ;;  %s591_s10 = sshll.u32 %s1009_s4, 4  ;;  %s592_s10 = int_to_ptr.vmem [resolvable:$true] %s591_s10 }
  0xbd   : > { %s698_s11 = sshll.u32 %s578_s9, 7  ;;  %s860_s24 = smov 256  }
  0xbe   : > { %s580_s8 = scalar_lea.hbm %s1108_s3, %s698_s11  ;;  %701 = sst [smem:[#allocation5]] (%p938_p3), %s860_s24 }
  0xbf   : > { %s861_s27 = smov 512   ;;  %s862_s28 = smov 2  }
  0xc0   : > { %702 = sst [smem:[#allocation5 + $0x1]] (%p938_p3), %s861_s27  ;;  %s863_s15 = smov 128  }
  0xc1   : > { %703 = sst [smem:[#allocation5 + $0x2]] (%p938_p3), %s862_s28  ;;  %s864_s16 = smov 8  }
  0xc2   : > { %704 = sst [smem:[#allocation5 + $0x3]] (%p938_p3), %s863_s15  ;;  %s865_s29 = smov 131072  }
  0xc3   : > { %705 = sst [smem:[#allocation5 + $0x4]] (%p938_p3), %s863_s15  ;;  %s866_s4 = smov 0  }
  0xc4   : > { %706 = sst [smem:[#allocation5 + $0x5]] (%p938_p3), %s864_s16 }
  0xc5   : > { %707 = dma.general (%p938_p3), %s592_s10, 2048, %s580_s8, %s566_s5, %s865_s29, [#allocation5], %s866_s4, 0  }
  0xc6 PF: > { %p713_p0 = scmp.ge.s32.totalorder %s855_s19, 2  ;;  %s619_s6 = sand.u32 1, %s827_s12  }
  0xc7   : > { %s620_s7 = scalar_lea.sflag [#allocation3], %s619_s6 }
  0xc8   : > { %p710_p1 = pnand %p713_p0, %p947_p8 }
  0xca   : > { %p711_p2 = pneg %p710_p1 }
  0xcc   : > { %822 = dma.done.wait (%p711_p2), %s620_s7, 2048  }
  0xcd   : > { %824 = vsyncadd (%p711_p2), %s620_s7, 4294965248  ;;  %s16_s19 = sadd.s32 1, %s855_s19   ;;  %s1111_s12 = smov %s831_s13 }
  0xce   : > { %p13_p4 = scmp.ge.s32.totalorder %s16_s19, 6   ;;  %s1112_s13 = smov %s835_s14 }
  0xcf   : > { %s1113_s14 = smov %s956_s30  ;;  %s1114_s15 = smov %s847_s17 }
  0xd0   : > { %s1115_s16 = smov %s851_s18  ;;  %s1116_s17 = smov %s1119_s22 }
  0xd1   : > { %s1117_s18 = smov %s1123_s23  ;;  %15 = sbr.rel (!%p13_p4) target bundleno = 5 (0x5), region = 72 }
  0xd6   :  { %625 = vsyncpa [#allocation3], 1 }
  0xd7   :  { %627 = vsyncpa [#allocation3 + $0x1], 1 }

// kernel: up_conv.2
= control target key start
LH: loop header
LB: loop body
LE: loop exit
PB: predicated region body
PF: predicated region fallthrough
CT: control target
= control target key end

     0   :  { %s3552_s15 = smov 0   ;;  %s3554_s16 = smov 0   ;;  %s4123_s0 = inlined_call_operand.vmem [shape: bf16[2,24,4,34], index: 0, kind: input, shape index: {}, may-alias: {0,1}]   ;;  %s4124_s1 = inlined_call_operand.vmem [shape: bf16[2,24,4,34], index: 1, kind: input, shape index: {}, may-alias: {0,1}]   ;;  %s4125_s2 = inlined_call_operand.vmem [shape: bf16[2,3,8,8], index: 2, kind: input, shape index: {}]   ;;  %s4126_s3 = inlined_call_operand.vmem [shape: f32[2,32,8,32], index: 3, kind: output, shape index: {0}]   ;;  %s4127_s4 = inlined_call_operand.vmem [shape: f32[2,2,8,32], index: 4, kind: output, shape index: {1}]  }
   0x1   :  { %s3556_s17 = smov 0   ;;  %s3558_s18 = smov 0  }
   0x2   :  { %s3560_s19 = smov 0  }
   0x3 LB: > { %s24_s20 = sadd.s32 1, %s3511_s17  ;;  %s27_s21 = sadd.s32 1, %s3515_s18  ;;  %s3519_s19 = sphi %s3560_s19, %s15_s19   ;;  %s3515_s18 = sphi %s3558_s18, %s4131_s18   ;;  %s3511_s17 = sphi %s3556_s17, %s4130_s17   ;;  %s3507_s16 = sphi %s3554_s16, %s4129_s16   ;;  %s3503_s15 = sphi %s3552_s15, %s4128_s15  }
   0x4   : > { %p25_p0 = scmp.ge.s32.totalorder %s24_s20, 2  ;;  %p2912_p1 = scmp.ge.s32.totalorder %s3519_s19, 1 }
   0x5   : > { %p207_p2 = scmp.lt.s32.totalorder %s3519_s19, 5 }
   0x6   : > { %s4133_s20 = smov (%p25_p0, %s24_s20), 0  ;;  %s4135_s21 = smov (!%p25_p0, %s27_s21), %s3515_s18 }
   0x7   : > { %p208_p3 = pnand %p2912_p1, %p207_p2  ;;  %p29_p4 = scmp.ge.s32.totalorder %s4135_s21, 2 }
   0x8   : > { %s2913_s22 = sshll.u32 (!%p208_p3), %s3503_s15, 3  ;;  %p257_p5 = scmp.lt.s32.totalorder (!%p208_p3), %s3507_s16, 1 }
   0x9   : > { %s4137_s21 = smov (%p29_p4, %s4135_s21), 0  ;;  %211 = sbr.rel (%p208_p3) target bundleno = 546 (0x222), region = 32 }
   0xa   : > { %p259_p6 = scmp.lt.s32.totalorder (!%p208_p3), %s2913_s22, 23  ;;  %s3039_s23 = sadd.s32 (!%p208_p3), 8, %s2913_s22 }
   0xb   : > { %p270_p7 = scmp.lt.s32.totalorder (!%p208_p3), %s3039_s23, 23  ;;  %s2917_s25 = sshll.u32 (!%p208_p3), %s3503_s15, 4 }
   0xc   : > { %p281_p8 = scmp.lt.s32.totalorder (!%p208_p3), %s2917_s25, 31  ;;  %p2922_p9 = scmp.ne.s32.totalorder (!%p208_p3), %s3503_s15, 0 }
   0xe   : > { %s4139_s16 = smov (!%p257_p5, %s3507_s16), 1  ;;  %s4141_s22 = smov (!%p259_p6, %s2913_s22), 23 }
   0xf   : > { %s3425_s24 = smul.u32 24, %s4139_s16  ;;  %s2918_s26 = sshll.u32 %s4139_s16, 5 }
  0x10   : > { %s3040_s29 = sshll.u32 %s4139_s16, 4  ;;  %s4143_s23 = smov (!%p270_p7, %s3039_s23), 23 }
  0x11   : > { %s262_s27 = sadd.s32 %s3425_s24, %s4141_s22  ;;  %s3594_s9 = scalar_lea.vmem %s4127_s4, %s3040_s29 }
  0x12   : > { %s2914_s28 = sshll.u32 %s262_s27, 1  ;;  %s4145_s25 = smov (!%p281_p8, %s2917_s25), 31 }
  0x13   : > { %s3589_s6 = scalar_lea.vmem %s4123_s0, %s2914_s28  ;;  %s273_s10 = sadd.s32 %s3425_s24, %s4143_s23 }
  0x14   : > { %s2916_s11 = sshll.u32 %s273_s10, 1  ;;  %s284_s12 = sadd.s32 %s2918_s26, %s4145_s25 }
  0x15   : > { %s3599_s22 = scalar_lea.vmem %s4124_s1, %s2916_s11  ;;  %s2919_s16 = sshll.u32 %s284_s12, 3 }
  0x16   : > { %s3604_s28 = scalar_lea.vmem %s4126_s3, %s2919_s16  ;;  %297 = sbr.rel (%p2922_p9) target bundleno = 29 (0x1d), region = 36 }
  0x1b   : > { %vm298_vm0 = vcmask 261120   ;;  %v3521_v0 = vmov 0.0  }
  0x1c   : > { %299 = vst.msk [vmem:[%s3594_s9] sm:$0xff] %vm298_vm0, %v3521_v0  ;;  %300 = vst.msk [vmem:[%s3594_s9 + $0x8] sm:$0xff] %vm298_vm0, %v3521_v0 }
  0x1d PF: > { %v2923_v1 = vld [vmem:[%s3589_s6 + $0x2] sm:$0x3]  ;;  %v324_v2 = vlaneseq  ;;  %v3522_v3 = vmov 1983009808   ;;  %v2924_v5 = vld [vmem:[%s3589_s6 + $0x4] sm:$0x3] }
  0x1e   : > { %v322_v4 = vunpack.c.l.s4 %v3522_v3  ;;  %v3523_v7 = vmov 0.0   ;;  %v320_v8 = vcombine.low %v2923_v1, %v2923_v1  ;;  %v488_v10 = vcombine.low %v2924_v5, %v2924_v5  ;;  %v2925_v11 = vld [vmem:[%s3589_s6 + $0x6] sm:$0x3]  ;;  %v301_v13 = vld [vmem:[%s3589_s6] sm:$0x3]  ;;  %s3525_s15 = smov 127  }
  0x1f   : > { %v325_v6 = vshrl.u32 %v324_v2, 7  ;;  %3143 = vmatprep.subr.bf16.mxu1 %v3523_v7  ;;  %3137 = vmatprep.subr.bf16.mxu0 %v3523_v7  ;;  %vm3524_vm1 = vmmov 0   ;;  %vm328_vm2 = vcmask 1041408   ;;  %v792_v16 = vcombine.low %v2925_v11, %v2925_v11  ;;  %v2926_v17 = vld [vmem:[%s3589_s6 + $0x8] sm:$0x3]  ;;  %s3526_s25 = smov 126  }
  0x20   : > { %v323_v9 = vunpack.c.0.s8 %v322_v4  ;;  %3145 = vmatprep.mubr.msk.bf16.mxu1 %vm3524_vm1, %v3523_v7  ;;  %3139 = vmatprep.mubr.msk.bf16.mxu0 %vm3524_vm1, %v3523_v7  ;;  %vm342_vm3 = vcmask 1043456   ;;  %v1093_v22 = vcombine.low %v2926_v17, %v2926_v17  ;;  %v2927_v23 = vld [vmem:[%s3589_s6 + $0xa] sm:$0x3]  ;;  %v332_v24 = vld [vmem:[%s4125_s2] sm:$0xf]  ;;  %vm338_vm4 = vcmask 64512  }
  0x21   : > { %v1394_v27 = vcombine.low %v2927_v23, %v2927_v23  ;;  %v2928_v28 = vld [vmem:[%s3589_s6 + $0xc] sm:$0x3]  ;;  %v2929_v32 = vld [vmem:[%s3589_s6 + $0xe] sm:$0x3]  ;;  %v316_v36 = vld [vmem:[%s3599_s22] sm:$0x3] }
  0x22   : > { %v326_v12 = vsub.s32 %v323_v9, %v325_v6  ;;  %v1695_v31 = vcombine.low %v2928_v28, %v2928_v28  ;;  %v1996_v35 = vcombine.low %v2929_v32, %v2929_v32  ;;  %v2297_v39 = vcombine.low %v316_v36, %v316_v36  ;;  %v3480_v43 = vld [vmem:[%s3599_s22 + $0x2] ss:$0 sps:$4 sm:$0x33]   ;;  %v2931_v50 = vld [vmem:[%s4125_s2 + $0x4] sm:$0xf] }
  0x23   : > { %v2937_v51 = vld [vmem:[%s4125_s2 + $0x10] sm:$0xf]  ;;  %v2934_v56 = vld [vmem:[%s4125_s2 + $0x8] sm:$0xf]  ;;  %v2940_v57 = vld [vmem:[%s4125_s2 + $0x14] sm:$0xf] }
  0x24   : > { %v327_v14 = vrot.slane %v320_v8, %v326_v12  ;;  %v495_v15 = vrot.slane %v488_v10, %v326_v12  ;;  %v799_v21 = vrot.slane %v792_v16, %v326_v12  ;;  %v1100_v26 = vrot.slane %v1093_v22, %v326_v12  ;;  %v2936_v60 = vld [vmem:[%s4125_s2 + $0xc] sm:$0xf]  ;;  %v653_v61 = vld [vmem:[%s4125_s2] sm:$0xf]  ;;  %v2943_v0 = vld [vmem:[%s4125_s2 + $0x4] sm:$0xf] }
  0x25   : > { %v1401_v30 = vrot.slane %v1394_v27, %v326_v12  ;;  %v1702_v34 = vrot.slane %v1695_v31, %v326_v12  ;;  %v2003_v38 = vrot.slane %v1996_v35, %v326_v12  ;;  %v2304_v41 = vrot.slane %v2297_v39, %v326_v12  ;;  %v2946_v3 = vld [vmem:[%s4125_s2 + $0x8] sm:$0xf]  ;;  %v2953_v4 = vld [vmem:[%s4125_s2 + $0x14] sm:$0xf]  ;;  %v2949_v8 = vld [vmem:[%s4125_s2 + $0xc] sm:$0xf] }
  0x26   : > { %v331_v18 = vsel %vm328_vm2, %v301_v13, %v327_v14  ;;  %v3622_v19 = vsel %vm328_vm2, %v2923_v1, %v495_v15  ;;  %v3637_v25 = vsel %vm328_vm2, %v2924_v5, %v799_v21  ;;  %v3648_v29 = vsel %vm328_vm2, %v2925_v11, %v1100_v26  ;;  %v2950_v1 = vld [vmem:[%s4125_s2 + $0x10] sm:$0xf]  ;;  %v954_v9 = vld [vmem:[%s4125_s2] sm:$0xf]  ;;  %v2959_v15 = vld [vmem:[%s4125_s2 + $0x8] sm:$0xf] }
  0x27   : > { %336 = vrot.lane.b32.xlu0 %v331_v18, %s3525_s15  ;;  %504 = vrot.lane.b32.xlu1 %v3622_v19, %s3525_s15  ;;  %v389_v20 = vsel %vm342_vm3, %v331_v18, 0  ;;  %v3656_v33 = vsel %vm328_vm2, %v2926_v17, %v1401_v30  ;;  %v3664_v37 = vsel %vm328_vm2, %v2927_v23, %v1702_v34  ;;  %v3671_v40 = vsel %vm328_vm2, %v2928_v28, %v2003_v38  ;;  %v2963_v13 = vld [vmem:[%s4125_s2 + $0x10] sm:$0xf]  ;;  %v2966_v16 = vld [vmem:[%s4125_s2 + $0x14] sm:$0xf] }
  0x28   : > { %3144 = vmatpush3.bf16.msra.mxu1 %v389_v20  ;;  %v3678_v42 = vsel %vm328_vm2, %v2929_v32, %v2304_v41  ;;  %v2605_v44 = vrot.slane %v3480_v43, %v326_v12  ;;  %v555_v58 = vsel %vm342_vm3, %v3622_v19, 0  ;;  %v857_v5 = vsel %vm342_vm3, %v3637_v25, 0  ;;  %v2956_v12 = vld [vmem:[%s4125_s2 + $0x4] sm:$0xf]  ;;  %v1255_v20 = vld [vmem:[%s4125_s2] sm:$0xf] }
  0x29   : > { %3155 = vmatprep.subr.bf16.mxu1 %v3523_v7  ;;  %v1158_v17 = vsel %vm342_vm3, %v3648_v29, 0  ;;  %v2969_v23 = vld [vmem:[%s4125_s2 + $0x4] sm:$0xf]  ;;  %v2972_v26 = vld [vmem:[%s4125_s2 + $0x8] sm:$0xf]  ;;  %v1459_v28 = vsel %vm342_vm3, %v3656_v33, 0 }
  0x2a   : > { %v3686_v45 = vsel %vm328_vm2, %v316_v36, %v2605_v44  ;;  %v2979_v27 = vld [vmem:[%s4125_s2 + $0x14] sm:$0xf]  ;;  %v2975_v34 = vld [vmem:[%s4125_s2 + $0xc] sm:$0xf]  ;;  %v1556_v35 = vld [vmem:[%s4125_s2] sm:$0xf] }
  0x2b   : > { %433 = vrot.lane.b32.xlu0 %v331_v18, %s3526_s25  ;;  %599 = vrot.lane.b32.xlu1 %v3622_v19, %s3526_s25  ;;  %v2962_v19 = vld [vmem:[%s4125_s2 + $0xc] sm:$0xf]  ;;  %v2982_v39 = vld [vmem:[%s4125_s2 + $0x4] sm:$0xf]  ;;  %vm482_vm5 = vcmask 261120  }
  0x2c   : > { %3146 = vmatmul.mubr.msk.bf16.vlgmr.msra.gmra.mxu1 %vm338_vm4, %v332_v24  ;;  %v2976_v24 = vld [vmem:[%s4125_s2 + $0x10] sm:$0xf]  ;;  %v2985_v44 = vld [vmem:[%s4125_s2 + $0x8] sm:$0xf] }
  0x2d   : > { %3157 = vmatprep.mubr.msk.bf16.mxu1 %vm3524_vm1, %v3523_v7  ;;  %v2989_v41 = vld [vmem:[%s4125_s2 + $0x10] sm:$0xf] }
  0x2f   : > { %806 = vrot.lane.b32.xlu0 %v3637_v25, %s3525_s15  ;;  %900 = vrot.lane.b32.xlu1 %v3637_v25, %s3526_s25 }
  0x33   : > { %1107 = vrot.lane.b32.xlu0 %v3648_v29, %s3525_s15  ;;  %1201 = vrot.lane.b32.xlu1 %v3648_v29, %s3526_s25 }
  0x37   : > { %1408 = vrot.lane.b32.xlu0 %v3656_v33, %s3525_s15  ;;  %1502 = vrot.lane.b32.xlu1 %v3656_v33, %s3526_s25 }
  0x3b   : > { %1709 = vrot.lane.b32.xlu0 %v3664_v37, %s3525_s15  ;;  %1803 = vrot.lane.b32.xlu1 %v3664_v37, %s3526_s25 }
  0x3f   : > { %2010 = vrot.lane.b32.xlu0 %v3671_v40, %s3525_s15  ;;  %2104 = vrot.lane.b32.xlu1 %v3671_v40, %s3526_s25 }
  0x43   : > { %2311 = vrot.lane.b32.xlu0 %v3678_v42, %s3525_s15  ;;  %2405 = vrot.lane.b32.xlu1 %v3678_v42, %s3526_s25 }
  0x47   : > { %2612 = vrot.lane.b32.xlu0 %v3686_v45, %s3525_s15  ;;  %2706 = vrot.lane.b32.xlu1 %v3686_v45, %s3526_s25 }
  0x99   : > { %v337_v46 = vpop.permute.xlu0 %336  ;;  %v505_v47 = vpop.permute.xlu1 %504 }
  0x9a   : > { %v344_v48 = vsel %vm342_vm3, %v337_v46, 0  ;;  %v510_v49 = vsel %vm342_vm3, %v505_v47, 0  ;;  %v2992_v46 = vld [vmem:[%s4125_s2 + $0x14] sm:$0xf]  ;;  %v1760_v47 = vsel %vm342_vm3, %v3664_v37, 0 }
  0x9b   : > { %3138 = vmatpush3.bf16.msra.mxu0 %v344_v48  ;;  %3156 = vmatpush3.bf16.msra.mxu1 %v510_v49  ;;  %v2988_v37 = vld [vmem:[%s4125_s2 + $0xc] sm:$0xf] }
  0x9c   : > { %3149 = vmatprep.subr.bf16.mxu0 %v3523_v7  ;;  %3167 = vmatprep.subr.bf16.mxu1 %v3523_v7 }
  0x9d   : > { %v434_v52 = vpop.permute.xlu0 %433  ;;  %v600_v53 = vpop.permute.xlu1 %599 }
  0x9e   : > { %v439_v54 = vsel %vm342_vm3, %v434_v52, 0  ;;  %3140 = vmatmul.mubr.msk.bf16.vlgmr.msra.gmra.mxu0 %vm338_vm4, %v2931_v50  ;;  %3158 = vmatmul.mubr.msk.bf16.vlgmr.msra.gmra.mxu1 %vm338_vm4, %v2937_v51  ;;  %v605_v55 = vsel %vm342_vm3, %v600_v53, 0  ;;  %v2995_v52 = vld [vmem:[%s4125_s2 + $0x4] sm:$0xf]  ;;  %v3002_v53 = vld [vmem:[%s4125_s2 + $0x10] sm:$0xf] }
  0x9f   : > { %3150 = vmatpush3.bf16.msra.mxu0 %v439_v54  ;;  %3151 = vmatprep.mubr.msk.bf16.mxu0 %vm3524_vm1, %v3523_v7 }
  0xa0   : > { %3161 = vmatprep.subr.bf16.mxu0 %v3523_v7  ;;  %3168 = vmatpush3.bf16.msra.mxu1 %v605_v55 }
  0xa1   : > { %3169 = vmatprep.mubr.msk.bf16.mxu1 %vm3524_vm1, %v3523_v7  ;;  %3179 = vmatprep.subr.bf16.mxu1 %v3523_v7  ;;  %v807_v59 = vpop.permute.xlu0 %806  ;;  %v901_v63 = vpop.permute.xlu1 %900 }
  0xa2   : > { %v812_v62 = vsel %vm342_vm3, %v807_v59, 0  ;;  %v906_v2 = vsel %vm342_vm3, %v901_v63, 0  ;;  %v2158_v59 = vld [vmem:[%s4125_s2] sm:$0xf]  ;;  %v3015_v63 = vld [vmem:[%s4125_s2 + $0x10] sm:$0xf] }
  0xa5   : > { %v1108_v6 = vpop.permute.xlu0 %1107  ;;  %v1202_v11 = vpop.permute.xlu1 %1201 }
  0xa6   : > { %3152 = vmatmul.mubr.msk.bf16.vlgmr.msra.gmra.mxu0 %vm338_vm4, %v2934_v56  ;;  %3170 = vmatmul.mubr.msk.bf16.vlgmr.msra.gmra.mxu1 %vm338_vm4, %v2940_v57  ;;  %v1113_v10 = vsel %vm342_vm3, %v1108_v6, 0  ;;  %v1207_v14 = vsel %vm342_vm3, %v1202_v11, 0  ;;  %v3005_v56 = vld [vmem:[%s4125_s2 + $0x14] sm:$0xf]  ;;  %v2061_v57 = vsel %vm342_vm3, %v3671_v40, 0 }
  0xa7   : > { %3162 = vmatpush3.bf16.msra.mxu0 %v555_v58  ;;  %3163 = vmatprep.mubr.msk.bf16.mxu0 %vm3524_vm1, %v3523_v7  ;;  %v3001_v40 = vld [vmem:[%s4125_s2 + $0xc] sm:$0xf] }
  0xa8   : > { %3173 = vmatprep.subr.bf16.mxu0 %v3523_v7  ;;  %3180 = vmatpush3.bf16.msra.mxu1 %v555_v58 }
  0xa9   : > { %3181 = vmatprep.mubr.msk.bf16.mxu1 %vm3524_vm1, %v3523_v7  ;;  %3191 = vmatprep.subr.bf16.mxu1 %v3523_v7  ;;  %v1409_v18 = vpop.permute.xlu0 %1408  ;;  %v1503_v22 = vpop.permute.xlu1 %1502 }
  0xaa   : > { %v1414_v21 = vsel %vm342_vm3, %v1409_v18, 0  ;;  %v1508_v25 = vsel %vm342_vm3, %v1503_v22, 0 }
  0xad   : > { %v1710_v32 = vpop.permute.xlu0 %1709  ;;  %v1804_v38 = vpop.permute.xlu1 %1803 }
  0xae   : > { %3164 = vmatmul.mubr.msk.bf16.vlgmr.msra.gmra.mxu0 %vm338_vm4, %v2936_v60  ;;  %3182 = vmatmul.mubr.msk.bf16.vlgmr.msra.gmra.mxu1 %vm338_vm4, %v653_v61  ;;  %v1715_v36 = vsel %vm342_vm3, %v1710_v32, 0  ;;  %v1809_v43 = vsel %vm342_vm3, %v1804_v38, 0 }
  0xaf   : > { %3174 = vmatpush3.bf16.msra.mxu0 %v510_v49  ;;  %3175 = vmatprep.mubr.msk.bf16.mxu0 %vm3524_vm1, %v3523_v7  ;;  %v1857_v49 = vld [vmem:[%s4125_s2] sm:$0xf] }
  0xb0   : > { %3185 = vmatprep.subr.bf16.mxu0 %v3523_v7  ;;  %3192 = vmatpush3.bf16.msra.mxu1 %v812_v62 }
  0xb1   : > { %3193 = vmatprep.mubr.msk.bf16.mxu1 %vm3524_vm1, %v3523_v7  ;;  %3203 = vmatprep.subr.bf16.mxu1 %v3523_v7  ;;  %v2011_v48 = vpop.permute.xlu0 %2010  ;;  %v2105_v51 = vpop.permute.xlu1 %2104 }
  0xb2   : > { %v2016_v50 = vsel %vm342_vm3, %v2011_v48, 0  ;;  %v2110_v54 = vsel %vm342_vm3, %v2105_v51, 0 }
  0xb5   : > { %v2312_v58 = vpop.permute.xlu0 %2311  ;;  %v2406_v61 = vpop.permute.xlu1 %2405 }
  0xb6   : > { %3176 = vmatmul.mubr.msk.bf16.vlgmr.msra.gmra.mxu0 %vm338_vm4, %v2943_v0  ;;  %3194 = vmatmul.mubr.msk.bf16.vlgmr.msra.gmra.mxu1 %vm338_vm4, %v2950_v1  ;;  %v2317_v60 = vsel %vm342_vm3, %v2312_v58, 0  ;;  %v2411_v0 = vsel %vm342_vm3, %v2406_v61, 0  ;;  %v3011_v1 = vld [vmem:[%s4125_s2 + $0x8] sm:$0xf] }
  0xb7   : > { %3186 = vmatpush3.bf16.msra.mxu0 %v605_v55  ;;  %3187 = vmatprep.mubr.msk.bf16.mxu0 %vm3524_vm1, %v3523_v7  ;;  %v2998_v55 = vld [vmem:[%s4125_s2 + $0x8] sm:$0xf] }
  0xb8   : > { %3197 = vmatprep.subr.bf16.mxu0 %v3523_v7  ;;  %3204 = vmatpush3.bf16.msra.mxu1 %v906_v2 }
  0xb9   : > { %3205 = vmatprep.mubr.msk.bf16.mxu1 %vm3524_vm1, %v3523_v7  ;;  %3215 = vmatprep.subr.bf16.mxu1 %v3523_v7 }
  0xbe   : > { %3188 = vmatmul.mubr.msk.bf16.vlgmr.msra.gmra.mxu0 %vm338_vm4, %v2946_v3  ;;  %3206 = vmatmul.mubr.msk.bf16.vlgmr.msra.gmra.mxu1 %vm338_vm4, %v2953_v4  ;;  %v2362_v3 = vsel %vm342_vm3, %v3678_v42, 0  ;;  %v2613_v4 = vpop.permute.xlu0 %2612  ;;  %v3014_v42 = vld [vmem:[%s4125_s2 + $0xc] sm:$0xf] }
  0xbf   : > { %3198 = vmatpush3.bf16.msra.mxu0 %v857_v5  ;;  %3199 = vmatprep.mubr.msk.bf16.mxu0 %vm3524_vm1, %v3523_v7  ;;  %v2618_v6 = vsel %vm342_vm3, %v2613_v4, 0 }
  0xc0   : > { %3209 = vmatprep.subr.bf16.mxu0 %v3523_v7  ;;  %3216 = vmatpush3.bf16.msra.mxu1 %v857_v5  ;;  %v2459_v5 = vld [vmem:[%s4125_s2] sm:$0xf] }
  0xc1   : > { %3217 = vmatprep.mubr.msk.bf16.mxu1 %vm3524_vm1, %v3523_v7  ;;  %3227 = vmatprep.subr.bf16.mxu1 %v3523_v7 }
  0xc6   : > { %3200 = vmatmul.mubr.msk.bf16.vlgmr.msra.gmra.mxu0 %vm338_vm4, %v2949_v8  ;;  %3218 = vmatmul.mubr.msk.bf16.vlgmr.msra.gmra.mxu1 %vm338_vm4, %v954_v9  ;;  %v2707_v8 = vpop.permute.xlu1 %2706  ;;  %v3021_v9 = vld [vmem:[%s4125_s2 + $0x4] sm:$0xf] }
  0xc7   : > { %3210 = vmatpush3.bf16.msra.mxu0 %v812_v62  ;;  %3211 = vmatprep.mubr.msk.bf16.mxu0 %vm3524_vm1, %v3523_v7  ;;  %v3008_v62 = vld [vmem:[%s4125_s2 + $0x4] sm:$0xf]  ;;  %v2712_v11 = vsel %vm342_vm3, %v2707_v8, 0 }
  0xc8   : > { %3221 = vmatprep.subr.bf16.mxu0 %v3523_v7  ;;  %3228 = vmatpush3.bf16.msra.mxu1 %v1113_v10 }
  0xc9   : > { %3229 = vmatprep.mubr.msk.bf16.mxu1 %vm3524_vm1, %v3523_v7  ;;  %3239 = vmatprep.subr.bf16.mxu1 %v3523_v7 }
  0xce   : > { %3212 = vmatmul.mubr.msk.bf16.vlgmr.msra.gmra.mxu0 %vm338_vm4, %v2956_v12  ;;  %3230 = vmatmul.mubr.msk.bf16.vlgmr.msra.gmra.mxu1 %vm338_vm4, %v2963_v13  ;;  %v3024_v12 = vld [vmem:[%s4125_s2 + $0x8] sm:$0xf]  ;;  %v3031_v13 = vld [vmem:[%s4125_s2 + $0x14] sm:$0xf] }
  0xcf   : > { %3222 = vmatpush3.bf16.msra.mxu0 %v906_v2  ;;  %3223 = vmatprep.mubr.msk.bf16.mxu0 %vm3524_vm1, %v3523_v7  ;;  %v3018_v2 = vld [vmem:[%s4125_s2 + $0x14] sm:$0xf] }
  0xd0   : > { %3233 = vmatprep.subr.bf16.mxu0 %v3523_v7  ;;  %3240 = vmatpush3.bf16.msra.mxu1 %v1207_v14 }
  0xd1   : > { %3241 = vmatprep.mubr.msk.bf16.mxu1 %vm3524_vm1, %v3523_v7  ;;  %3251 = vmatprep.subr.bf16.mxu1 %v3523_v7 }
  0xd6   : > { %3224 = vmatmul.mubr.msk.bf16.vlgmr.msra.gmra.mxu0 %vm338_vm4, %v2959_v15  ;;  %3242 = vmatmul.mubr.msk.bf16.vlgmr.msra.gmra.mxu1 %vm338_vm4, %v2966_v16  ;;  %v3027_v15 = vld [vmem:[%s4125_s2 + $0xc] sm:$0xf] }
  0xd7   : > { %3234 = vmatpush3.bf16.msra.mxu0 %v1158_v17  ;;  %3235 = vmatprep.mubr.msk.bf16.mxu0 %vm3524_vm1, %v3523_v7 }
  0xd8   : > { %3245 = vmatprep.subr.bf16.mxu0 %v3523_v7  ;;  %3252 = vmatpush3.bf16.msra.mxu1 %v1158_v17 }
  0xd9   : > { %3253 = vmatprep.mubr.msk.bf16.mxu1 %vm3524_vm1, %v3523_v7  ;;  %3263 = vmatprep.subr.bf16.mxu1 %v3523_v7 }
  0xde   : > { %3236 = vmatmul.mubr.msk.bf16.vlgmr.msra.gmra.mxu0 %vm338_vm4, %v2962_v19  ;;  %3254 = vmatmul.mubr.msk.bf16.vlgmr.msra.gmra.mxu1 %vm338_vm4, %v1255_v20 }
  0xdf   : > { %3246 = vmatpush3.bf16.msra.mxu0 %v1113_v10  ;;  %3247 = vmatprep.mubr.msk.bf16.mxu0 %vm3524_vm1, %v3523_v7  ;;  %v3028_v10 = vld [vmem:[%s4125_s2 + $0x10] sm:$0xf] }
  0xe0   : > { %3257 = vmatprep.subr.bf16.mxu0 %v3523_v7  ;;  %3264 = vmatpush3.bf16.msra.mxu1 %v1414_v21 }
  0xe1   : > { %3265 = vmatprep.mubr.msk.bf16.mxu1 %vm3524_vm1, %v3523_v7  ;;  %3275 = vmatprep.subr.bf16.mxu1 %v3523_v7 }
  0xe6   : > { %3248 = vmatmul.mubr.msk.bf16.vlgmr.msra.gmra.mxu0 %vm338_vm4, %v2969_v23  ;;  %3266 = vmatmul.mubr.msk.bf16.vlgmr.msra.gmra.mxu1 %vm338_vm4, %v2976_v24 }
  0xe7   : > { %3258 = vmatpush3.bf16.msra.mxu0 %v1207_v14  ;;  %3259 = vmatprep.mubr.msk.bf16.mxu0 %vm3524_vm1, %v3523_v7  ;;  %v2663_v14 = vsel %vm342_vm3, %v3686_v45, 0 }
  0xe8   : > { %3269 = vmatprep.subr.bf16.mxu0 %v3523_v7  ;;  %3276 = vmatpush3.bf16.msra.mxu1 %v1508_v25 }
  0xe9   : > { %3277 = vmatprep.mubr.msk.bf16.mxu1 %vm3524_vm1, %v3523_v7  ;;  %3287 = vmatprep.subr.bf16.mxu1 %v3523_v7 }
  0xec   : > { %v3858_v29 = vpop.f32.mrf.mxu1 }
  0xee   : > { %3260 = vmatmul.mubr.msk.bf16.vlgmr.msra.gmra.mxu0 %vm338_vm4, %v2972_v26  ;;  %3278 = vmatmul.mubr.msk.bf16.vlgmr.msra.gmra.mxu1 %vm338_vm4, %v2979_v27  ;;  %v3147_v30 = vpop.f32.mrf.mxu1 }
  0xef   : > { %3270 = vmatpush3.bf16.msra.mxu0 %v1459_v28  ;;  %3271 = vmatprep.mubr.msk.bf16.mxu0 %vm3524_vm1, %v3523_v7 }
  0xf0   : > { %3281 = vmatprep.subr.bf16.mxu0 %v3523_v7  ;;  %3288 = vmatpush3.bf16.msra.mxu1 %v1459_v28  ;;  %v428_v31 = vpop.f32.mrf.mxu1 }
  0xf1   : > { %3289 = vmatprep.mubr.msk.bf16.mxu1 %vm3524_vm1, %v3523_v7  ;;  %3299 = vmatprep.subr.bf16.mxu1 %v3523_v7 }
  0xf2   : > { %v3148_v33 = vpop.f32.mrf.mxu1 }
  0xf6   : > { %3272 = vmatmul.mubr.msk.bf16.vlgmr.msra.gmra.mxu0 %vm338_vm4, %v2975_v34  ;;  %3290 = vmatmul.mubr.msk.bf16.vlgmr.msra.gmra.mxu1 %vm338_vm4, %v1556_v35 }
  0xf7   : > { %3282 = vmatpush3.bf16.msra.mxu0 %v1414_v21  ;;  %3283 = vmatprep.mubr.msk.bf16.mxu0 %vm3524_vm1, %v3523_v7 }
  0xf8   : > { %3293 = vmatprep.subr.bf16.mxu0 %v3523_v7  ;;  %3300 = vmatpush3.bf16.msra.mxu1 %v1715_v36 }
  0xf9   : > { %3301 = vmatprep.mubr.msk.bf16.mxu1 %vm3524_vm1, %v3523_v7  ;;  %3311 = vmatprep.subr.bf16.mxu1 %v3523_v7 }
  0xfe   : > { %3284 = vmatmul.mubr.msk.bf16.vlgmr.msra.gmra.mxu0 %vm338_vm4, %v2982_v39  ;;  %3302 = vmatmul.mubr.msk.bf16.vlgmr.msra.gmra.mxu1 %vm338_vm4, %v2989_v41 }
  0xff   : > { %3294 = vmatpush3.bf16.msra.mxu0 %v1508_v25  ;;  %3295 = vmatprep.mubr.msk.bf16.mxu0 %vm3524_vm1, %v3523_v7 }
 0x100   : > { %3305 = vmatprep.subr.bf16.mxu0 %v3523_v7  ;;  %3312 = vmatpush3.bf16.msra.mxu1 %v1809_v43 }
 0x101   : > { %3313 = vmatprep.mubr.msk.bf16.mxu1 %vm3524_vm1, %v3523_v7  ;;  %3323 = vmatprep.subr.bf16.mxu1 %v3523_v7 }
 0x106   : > { %3296 = vmatmul.mubr.msk.bf16.vlgmr.msra.gmra.mxu0 %vm338_vm4, %v2985_v44  ;;  %3314 = vmatmul.mubr.msk.bf16.vlgmr.msra.gmra.mxu1 %vm338_vm4, %v2992_v46 }
 0x107   : > { %3306 = vmatpush3.bf16.msra.mxu0 %v1760_v47  ;;  %3307 = vmatprep.mubr.msk.bf16.mxu0 %vm3524_vm1, %v3523_v7 }
 0x108   : > { %3317 = vmatprep.subr.bf16.mxu0 %v3523_v7  ;;  %3324 = vmatpush3.bf16.msra.mxu1 %v1760_v47 }
 0x109   : > { %3325 = vmatprep.mubr.msk.bf16.mxu1 %vm3524_vm1, %v3523_v7  ;;  %3335 = vmatprep.subr.bf16.mxu1 %v3523_v7 }
 0x10e   : > { %3308 = vmatmul.mubr.msk.bf16.vlgmr.msra.gmra.mxu0 %vm338_vm4, %v2988_v37  ;;  %3326 = vmatmul.mubr.msk.bf16.vlgmr.msra.gmra.mxu1 %vm338_vm4, %v1857_v49 }
 0x10f   : > { %3318 = vmatpush3.bf16.msra.mxu0 %v1715_v36  ;;  %3319 = vmatprep.mubr.msk.bf16.mxu0 %vm3524_vm1, %v3523_v7 }
 0x110   : > { %3329 = vmatprep.subr.bf16.mxu0 %v3523_v7  ;;  %3336 = vmatpush3.bf16.msra.mxu1 %v2016_v50 }
 0x111   : > { %3337 = vmatprep.mubr.msk.bf16.mxu1 %vm3524_vm1, %v3523_v7  ;;  %3347 = vmatprep.subr.bf16.mxu1 %v3523_v7 }
 0x116   : > { %3320 = vmatmul.mubr.msk.bf16.vlgmr.msra.gmra.mxu0 %vm338_vm4, %v2995_v52  ;;  %3338 = vmatmul.mubr.msk.bf16.vlgmr.msra.gmra.mxu1 %vm338_vm4, %v3002_v53 }
 0x117   : > { %3330 = vmatpush3.bf16.msra.mxu0 %v1809_v43  ;;  %3331 = vmatprep.mubr.msk.bf16.mxu0 %vm3524_vm1, %v3523_v7 }
 0x118   : > { %3341 = vmatprep.subr.bf16.mxu0 %v3523_v7  ;;  %3348 = vmatpush3.bf16.msra.mxu1 %v2110_v54 }
 0x119   : > { %3349 = vmatprep.mubr.msk.bf16.mxu1 %vm3524_vm1, %v3523_v7  ;;  %3359 = vmatprep.subr.bf16.mxu1 %v3523_v7 }
 0x11e   : > { %3332 = vmatmul.mubr.msk.bf16.vlgmr.msra.gmra.mxu0 %vm338_vm4, %v2998_v55  ;;  %3350 = vmatmul.mubr.msk.bf16.vlgmr.msra.gmra.mxu1 %vm338_vm4, %v3005_v56 }
 0x11f   : > { %3342 = vmatpush3.bf16.msra.mxu0 %v2061_v57  ;;  %3343 = vmatprep.mubr.msk.bf16.mxu0 %vm3524_vm1, %v3523_v7 }
 0x120   : > { %3353 = vmatprep.subr.bf16.mxu0 %v3523_v7  ;;  %3360 = vmatpush3.bf16.msra.mxu1 %v2061_v57 }
 0x121   : > { %3361 = vmatprep.mubr.msk.bf16.mxu1 %vm3524_vm1, %v3523_v7  ;;  %3371 = vmatprep.subr.bf16.mxu1 %v3523_v7 }
 0x126   : > { %3344 = vmatmul.mubr.msk.bf16.vlgmr.msra.gmra.mxu0 %vm338_vm4, %v3001_v40  ;;  %3362 = vmatmul.mubr.msk.bf16.vlgmr.msra.gmra.mxu1 %vm338_vm4, %v2158_v59 }
 0x127   : > { %3354 = vmatpush3.bf16.msra.mxu0 %v2016_v50  ;;  %3355 = vmatprep.mubr.msk.bf16.mxu0 %vm3524_vm1, %v3523_v7 }
 0x128   : > { %3365 = vmatprep.subr.bf16.mxu0 %v3523_v7  ;;  %3372 = vmatpush3.bf16.msra.mxu1 %v2317_v60 }
 0x129   : > { %3373 = vmatprep.mubr.msk.bf16.mxu1 %vm3524_vm1, %v3523_v7  ;;  %3383 = vmatprep.subr.bf16.mxu1 %v3523_v7 }
 0x12e   : > { %3356 = vmatmul.mubr.msk.bf16.vlgmr.msra.gmra.mxu0 %vm338_vm4, %v3008_v62  ;;  %3374 = vmatmul.mubr.msk.bf16.vlgmr.msra.gmra.mxu1 %vm338_vm4, %v3015_v63 }
 0x12f   : > { %3366 = vmatpush3.bf16.msra.mxu0 %v2110_v54  ;;  %3367 = vmatprep.mubr.msk.bf16.mxu0 %vm3524_vm1, %v3523_v7 }
 0x130   : > { %3377 = vmatprep.subr.bf16.mxu0 %v3523_v7  ;;  %3384 = vmatpush3.bf16.msra.mxu1 %v2411_v0 }
 0x131   : > { %3385 = vmatprep.mubr.msk.bf16.mxu1 %vm3524_vm1, %v3523_v7  ;;  %3395 = vmatprep.subr.bf16.mxu1 %v3523_v7 }
 0x136   : > { %3368 = vmatmul.mubr.msk.bf16.vlgmr.msra.gmra.mxu0 %vm338_vm4, %v3011_v1  ;;  %3386 = vmatmul.mubr.msk.bf16.vlgmr.msra.gmra.mxu1 %vm338_vm4, %v3018_v2 }
 0x137   : > { %3378 = vmatpush3.bf16.msra.mxu0 %v2362_v3  ;;  %3379 = vmatprep.mubr.msk.bf16.mxu0 %vm3524_vm1, %v3523_v7 }
 0x138   : > { %3389 = vmatprep.subr.bf16.mxu0 %v3523_v7  ;;  %3396 = vmatpush3.bf16.msra.mxu1 %v2362_v3 }
 0x139   : > { %3397 = vmatprep.mubr.msk.bf16.mxu1 %vm3524_vm1, %v3523_v7  ;;  %3407 = vmatprep.subr.bf16.mxu1 %v3523_v7 }
 0x13e   : > { %3380 = vmatmul.mubr.msk.bf16.vlgmr.msra.gmra.mxu0 %vm338_vm4, %v3014_v42  ;;  %3398 = vmatmul.mubr.msk.bf16.vlgmr.msra.gmra.mxu1 %vm338_vm4, %v2459_v5 }
 0x13f   : > { %3390 = vmatpush3.bf16.msra.mxu0 %v2317_v60  ;;  %3391 = vmatprep.mubr.msk.bf16.mxu0 %vm3524_vm1, %v3523_v7 }
 0x140   : > { %3401 = vmatprep.subr.bf16.mxu0 %v3523_v7  ;;  %3408 = vmatpush3.bf16.msra.mxu1 %v2618_v6 }
 0x141   : > { %3409 = vmatprep.mubr.msk.bf16.mxu1 %vm3524_vm1, %v3523_v7  ;;  %3419 = vmatprep.subr.bf16.mxu1 %v3523_v7 }
 0x146   : > { %3392 = vmatmul.mubr.msk.bf16.vlgmr.msra.gmra.mxu0 %vm338_vm4, %v3021_v9  ;;  %3410 = vmatmul.mubr.msk.bf16.vlgmr.msra.gmra.mxu1 %vm338_vm4, %v3028_v10 }
 0x147   : > { %3402 = vmatpush3.bf16.msra.mxu0 %v2411_v0  ;;  %3403 = vmatprep.mubr.msk.bf16.mxu0 %vm3524_vm1, %v3523_v7 }
 0x148   : > { %3413 = vmatprep.subr.bf16.mxu0 %v3523_v7  ;;  %3420 = vmatpush3.bf16.msra.mxu1 %v2712_v11 }
 0x149   : > { %3421 = vmatprep.mubr.msk.bf16.mxu1 %vm3524_vm1, %v3523_v7 }
 0x14e   : > { %3404 = vmatmul.mubr.msk.bf16.vlgmr.msra.gmra.mxu0 %vm338_vm4, %v3024_v12  ;;  %3422 = vmatmul.mubr.msk.bf16.vlgmr.msra.gmra.mxu1 %vm338_vm4, %v3031_v13 }
 0x14f   : > { %3414 = vmatpush3.bf16.msra.mxu0 %v2663_v14  ;;  %3415 = vmatprep.mubr.msk.bf16.mxu0 %vm3524_vm1, %v3523_v7 }
 0x156   : > { %3416 = vmatmul.mubr.msk.bf16.vlgmr.msra.gmra.mxu0 %vm338_vm4, %v3027_v15 }
 0x15e   : > { %v380_v16 = vpop.f32.mrf.mxu0  ;;  %v546_v17 = vpop.f32.mrf.mxu1 }
 0x15f   : > { %v426_v23 = vadd.f32 %v3858_v29, %v380_v16 }
 0x160   : > { %v3141_v18 = vpop.f32.mrf.mxu0  ;;  %v3159_v19 = vpop.f32.mrf.mxu1 }
 0x162   : > { %v383_v45 = vpop.f32.mrf.mxu0  ;;  %v549_v20 = vpop.f32.mrf.mxu1 }
 0x164   : > { %v3142_v21 = vpop.f32.mrf.mxu0  ;;  %v3160_v22 = vpop.f32.mrf.mxu1 }
 0x166   : > { %v475_v24 = vpop.f32.mrf.mxu0  ;;  %v641_v7 = vpop.f32.mrf.mxu1 }
 0x167   : > { %v481_v25 = vadd.f32 %v475_v24, %v426_v23 }
 0x168   : > { %v3153_v26 = vpop.f32.mrf.mxu0  ;;  %v3171_v27 = vpop.f32.mrf.mxu1 }
 0x169   : > { %483 = vst.msk [vmem:[%s3604_s28] sm:$0xff] %vm482_vm5, %v481_v25  ;;  %v485_v43 = vmul.f32 %v481_v25, %v481_v25 }
 0x16a   : > { %v478_v28 = vpop.f32.mrf.mxu0  ;;  %v644_v30 = vpop.f32.mrf.mxu1 }
 0x16c   : > { %v3154_v31 = vpop.f32.mrf.mxu0  ;;  %v3172_v32 = vpop.f32.mrf.mxu1 }
 0x16e   : > { %v591_v33 = vpop.f32.mrf.mxu0  ;;  %v735_v34 = vpop.f32.mrf.mxu1 }
 0x16f   : > { %v592_v35 = vadd.f32 %v591_v33, %v546_v17 }
 0x170   : > { %v3165_v36 = vpop.f32.mrf.mxu0  ;;  %v3183_v38 = vpop.f32.mrf.mxu1 }
 0x171   : > { %v647_v39 = vadd.f32 %v641_v7, %v592_v35 }
 0x172   : > { %v594_v29 = vpop.f32.mrf.mxu0  ;;  %v738_v41 = vpop.f32.mrf.mxu1 }
 0x173   : > { %2942 = vst.msk [vmem:[%s3604_s28 + $0x8] sm:$0xff] %vm482_vm5, %v647_v39  ;;  %v651_v44 = vmul.f32 %v647_v39, %v647_v39  ;;  %v650_v46 = vadd.f32 %v647_v39, %v481_v25 }
 0x174   : > { %v3166_v47 = vpop.f32.mrf.mxu0  ;;  %v3184_v48 = vpop.f32.mrf.mxu1 }
 0x175   : > { %v652_v37 = vadd.f32 %v651_v44, %v485_v43 }
 0x176   : > { %v692_v49 = vpop.f32.mrf.mxu0  ;;  %v848_v50 = vpop.f32.mrf.mxu1 }
 0x177   : > { %v736_v57 = vadd.f32 %v735_v34, %v692_v49 }
 0x178   : > { %v3177_v51 = vpop.f32.mrf.mxu0  ;;  %v3195_v52 = vpop.f32.mrf.mxu1 }
 0x17a   : > { %v695_v53 = vpop.f32.mrf.mxu0  ;;  %v851_v54 = vpop.f32.mrf.mxu1 }
 0x17c   : > { %v3178_v55 = vpop.f32.mrf.mxu0  ;;  %v3196_v56 = vpop.f32.mrf.mxu1 }
 0x17e   : > { %v779_v58 = vpop.f32.mrf.mxu0  ;;  %v942_v40 = vpop.f32.mrf.mxu1 }
 0x17f   : > { %v785_v59 = vadd.f32 %v779_v58, %v736_v57 }
 0x180   : > { %v3189_v60 = vpop.f32.mrf.mxu0  ;;  %v3207_v61 = vpop.f32.mrf.mxu1 }
 0x181   : > { %2948 = vst.msk [vmem:[%s3604_s28 + $0x10] sm:$0xff] %vm482_vm5, %v785_v59  ;;  %v788_v62 = vadd.f32 %v785_v59, %v650_v46  ;;  %v789_v63 = vmul.f32 %v785_v59, %v785_v59 }
 0x182   : > { %v782_v0 = vpop.f32.mrf.mxu0  ;;  %v945_v1 = vpop.f32.mrf.mxu1 }
 0x183   : > { %v790_v2 = vadd.f32 %v789_v63, %v652_v37 }
 0x184   : > { %v3190_v3 = vpop.f32.mrf.mxu0  ;;  %v3208_v4 = vpop.f32.mrf.mxu1 }
 0x186   : > { %v893_v42 = vpop.f32.mrf.mxu0  ;;  %v1036_v5 = vpop.f32.mrf.mxu1 }
 0x187   : > { %v894_v6 = vadd.f32 %v893_v42, %v848_v50 }
 0x188   : > { %v3201_v8 = vpop.f32.mrf.mxu0  ;;  %v3219_v9 = vpop.f32.mrf.mxu1 }
 0x189   : > { %v948_v10 = vadd.f32 %v942_v40, %v894_v6 }
 0x18a   : > { %v896_v11 = vpop.f32.mrf.mxu0  ;;  %v1039_v12 = vpop.f32.mrf.mxu1 }
 0x18b   : > { %2955 = vst.msk [vmem:[%s3604_s28 + $0x18] sm:$0xff] %vm482_vm5, %v948_v10  ;;  %v952_v13 = vmul.f32 %v948_v10, %v948_v10  ;;  %v951_v14 = vadd.f32 %v948_v10, %v788_v62 }
 0x18c   : > { %v3202_v15 = vpop.f32.mrf.mxu0  ;;  %v3220_v16 = vpop.f32.mrf.mxu1 }
 0x18d   : > { %v953_v17 = vadd.f32 %v952_v13, %v790_v2 }
 0x18e   : > { %v993_v18 = vpop.f32.mrf.mxu0  ;;  %v1149_v19 = vpop.f32.mrf.mxu1 }
 0x18f   : > { %v1037_v7 = vadd.f32 %v1036_v5, %v993_v18 }
 0x190   : > { %v3213_v45 = vpop.f32.mrf.mxu0  ;;  %v3231_v20 = vpop.f32.mrf.mxu1 }
 0x192   : > { %v996_v21 = vpop.f32.mrf.mxu0  ;;  %v1152_v22 = vpop.f32.mrf.mxu1 }
 0x194   : > { %v3214_v23 = vpop.f32.mrf.mxu0  ;;  %v3232_v24 = vpop.f32.mrf.mxu1 }
 0x196   : > { %v1080_v25 = vpop.f32.mrf.mxu0  ;;  %v1243_v26 = vpop.f32.mrf.mxu1 }
 0x197   : > { %v1086_v27 = vadd.f32 %v1080_v25, %v1037_v7 }
 0x198   : > { %v3225_v28 = vpop.f32.mrf.mxu0  ;;  %v3243_v30 = vpop.f32.mrf.mxu1 }
 0x199   : > { %2961 = vst.msk [vmem:[%s3604_s28 + $0x20] sm:$0xff] %vm482_vm5, %v1086_v27  ;;  %v1089_v31 = vadd.f32 %v1086_v27, %v951_v14  ;;  %v1090_v32 = vmul.f32 %v1086_v27, %v1086_v27 }
 0x19a   : > { %v1083_v33 = vpop.f32.mrf.mxu0  ;;  %v1246_v34 = vpop.f32.mrf.mxu1 }
 0x19b   : > { %v1091_v35 = vadd.f32 %v1090_v32, %v953_v17 }
 0x19c   : > { %v3226_v36 = vpop.f32.mrf.mxu0  ;;  %v3244_v38 = vpop.f32.mrf.mxu1 }
 0x19e   : > { %v1194_v39 = vpop.f32.mrf.mxu0  ;;  %v1337_v29 = vpop.f32.mrf.mxu1 }
 0x19f   : > { %v1195_v41 = vadd.f32 %v1194_v39, %v1149_v19 }
 0x1a0   : > { %v3237_v43 = vpop.f32.mrf.mxu0  ;;  %v3255_v44 = vpop.f32.mrf.mxu1 }
 0x1a1   : > { %v1249_v46 = vadd.f32 %v1243_v26, %v1195_v41 }
 0x1a2   : > { %v1197_v47 = vpop.f32.mrf.mxu0  ;;  %v1340_v48 = vpop.f32.mrf.mxu1 }
 0x1a3   : > { %2968 = vst.msk [vmem:[%s3604_s28 + $0x28] sm:$0xff] %vm482_vm5, %v1249_v46  ;;  %v1253_v37 = vmul.f32 %v1249_v46, %v1249_v46  ;;  %v1252_v49 = vadd.f32 %v1249_v46, %v1089_v31 }
 0x1a4   : > { %v3238_v50 = vpop.f32.mrf.mxu0  ;;  %v3256_v51 = vpop.f32.mrf.mxu1 }
 0x1a5   : > { %v1254_v52 = vadd.f32 %v1253_v37, %v1091_v35 }
 0x1a6   : > { %v1294_v53 = vpop.f32.mrf.mxu0  ;;  %v1450_v54 = vpop.f32.mrf.mxu1 }
 0x1a7   : > { %v1338_v60 = vadd.f32 %v1337_v29, %v1294_v53 }
 0x1a8   : > { %v3249_v55 = vpop.f32.mrf.mxu0  ;;  %v3267_v56 = vpop.f32.mrf.mxu1 }
 0x1aa   : > { %v1297_v57 = vpop.f32.mrf.mxu0  ;;  %v1453_v58 = vpop.f32.mrf.mxu1 }
 0x1ac   : > { %v3250_v40 = vpop.f32.mrf.mxu0  ;;  %v3268_v59 = vpop.f32.mrf.mxu1 }
 0x1ae   : > { %v1381_v61 = vpop.f32.mrf.mxu0  ;;  %v1544_v62 = vpop.f32.mrf.mxu1 }
 0x1af   : > { %v1387_v63 = vadd.f32 %v1381_v61, %v1338_v60 }
 0x1b0   : > { %v3261_v0 = vpop.f32.mrf.mxu0  ;;  %v3279_v1 = vpop.f32.mrf.mxu1 }
 0x1b1   : > { %2974 = vst.msk [vmem:[%s3604_s28 + $0x30] sm:$0xff] %vm482_vm5, %v1387_v63  ;;  %v1390_v2 = vadd.f32 %v1387_v63, %v1252_v49  ;;  %v1391_v3 = vmul.f32 %v1387_v63, %v1387_v63 }
 0x1b2   : > { %v1384_v4 = vpop.f32.mrf.mxu0  ;;  %v1547_v42 = vpop.f32.mrf.mxu1 }
 0x1b3   : > { %v1392_v5 = vadd.f32 %v1391_v3, %v1254_v52 }
 0x1b4   : > { %v3262_v6 = vpop.f32.mrf.mxu0  ;;  %v3280_v8 = vpop.f32.mrf.mxu1 }
 0x1b6   : > { %v1495_v9 = vpop.f32.mrf.mxu0  ;;  %v1638_v10 = vpop.f32.mrf.mxu1 }
 0x1b7   : > { %v1496_v11 = vadd.f32 %v1495_v9, %v1450_v54 }
 0x1b8   : > { %v3273_v12 = vpop.f32.mrf.mxu0  ;;  %v3291_v13 = vpop.f32.mrf.mxu1 }
 0x1b9   : > { %v1550_v14 = vadd.f32 %v1544_v62, %v1496_v11 }
 0x1ba   : > { %v1498_v15 = vpop.f32.mrf.mxu0  ;;  %v1641_v16 = vpop.f32.mrf.mxu1 }
 0x1bb   : > { %2981 = vst.msk [vmem:[%s3604_s28 + $0x38] sm:$0xff] %vm482_vm5, %v1550_v14  ;;  %v1554_v17 = vmul.f32 %v1550_v14, %v1550_v14  ;;  %v1553_v18 = vadd.f32 %v1550_v14, %v1390_v2 }
 0x1bc   : > { %v3274_v19 = vpop.f32.mrf.mxu0  ;;  %v3292_v45 = vpop.f32.mrf.mxu1 }
 0x1bd   : > { %v1555_v20 = vadd.f32 %v1554_v17, %v1392_v5 }
 0x1be   : > { %v1595_v21 = vpop.f32.mrf.mxu0  ;;  %v1751_v22 = vpop.f32.mrf.mxu1 }
 0x1bf   : > { %v1639_v28 = vadd.f32 %v1638_v10, %v1595_v21 }
 0x1c0   : > { %v3285_v23 = vpop.f32.mrf.mxu0  ;;  %v3303_v24 = vpop.f32.mrf.mxu1 }
 0x1c2   : > { %v1598_v7 = vpop.f32.mrf.mxu0  ;;  %v1754_v25 = vpop.f32.mrf.mxu1 }
 0x1c4   : > { %v3286_v26 = vpop.f32.mrf.mxu0  ;;  %v3304_v27 = vpop.f32.mrf.mxu1 }
 0x1c6   : > { %v1682_v30 = vpop.f32.mrf.mxu0  ;;  %v1845_v31 = vpop.f32.mrf.mxu1 }
 0x1c7   : > { %v1688_v32 = vadd.f32 %v1682_v30, %v1639_v28 }
 0x1c8   : > { %v3297_v33 = vpop.f32.mrf.mxu0  ;;  %v3315_v34 = vpop.f32.mrf.mxu1 }
 0x1c9   : > { %2987 = vst.msk [vmem:[%s3604_s28 + $0x40] sm:$0xff] %vm482_vm5, %v1688_v32  ;;  %v4070_v35 = vadd.f32 %v1688_v32, %v1553_v18  ;;  %v1692_v36 = vmul.f32 %v1688_v32, %v1688_v32 }
 0x1ca   : > { %v1685_v38 = vpop.f32.mrf.mxu0  ;;  %v1848_v39 = vpop.f32.mrf.mxu1 }
 0x1cb   : > { %v4072_v29 = vadd.f32 %v1692_v36, %v1555_v20 }
 0x1cc   : > { %v3298_v41 = vpop.f32.mrf.mxu0  ;;  %v3316_v43 = vpop.f32.mrf.mxu1 }
 0x1ce   : > { %v1796_v44 = vpop.f32.mrf.mxu0  ;;  %v1939_v46 = vpop.f32.mrf.mxu1 }
 0x1cf   : > { %v1797_v47 = vadd.f32 %v1796_v44, %v1751_v22 }
 0x1d0   : > { %v3309_v48 = vpop.f32.mrf.mxu0  ;;  %v3327_v37 = vpop.f32.mrf.mxu1 }
 0x1d1   : > { %v4074_v49 = vadd.f32 %v1845_v31, %v1797_v47 }
 0x1d2   : > { %v1799_v50 = vpop.f32.mrf.mxu0  ;;  %v1942_v51 = vpop.f32.mrf.mxu1 }
 0x1d3   : > { %2994 = vst.msk [vmem:[%s3604_s28 + $0x48] sm:$0xff] %vm482_vm5, %v4074_v49 }
 0x1d4   : > { %v3310_v52 = vpop.f32.mrf.mxu0  ;;  %v3328_v53 = vpop.f32.mrf.mxu1 }
 0x1d6   : > { %v1896_v54 = vpop.f32.mrf.mxu0  ;;  %v2052_v55 = vpop.f32.mrf.mxu1 }
 0x1d7   : > { %v1940_v61 = vadd.f32 %v1939_v46, %v1896_v54 }
 0x1d8   : > { %v3321_v56 = vpop.f32.mrf.mxu0  ;;  %v3339_v57 = vpop.f32.mrf.mxu1 }
 0x1d9   : > { %v1855_v57 = vmul.f32 %v4074_v49, %v4074_v49 }
 0x1da   : > { %v1899_v58 = vpop.f32.mrf.mxu0  ;;  %v2055_v40 = vpop.f32.mrf.mxu1 }
 0x1dc   : > { %v3322_v59 = vpop.f32.mrf.mxu0  ;;  %v3340_v60 = vpop.f32.mrf.mxu1 }
 0x1dd   : > { %v1854_v60 = vadd.f32 %v4074_v49, %v4070_v35 }
 0x1de   : > { %v1983_v62 = vpop.f32.mrf.mxu0  ;;  %v2146_v63 = vpop.f32.mrf.mxu1 }
 0x1df   : > { %v4079_v0 = vadd.f32 %v1983_v62, %v1940_v61 }
 0x1e0   : > { %v3333_v1 = vpop.f32.mrf.mxu0  ;;  %v3351_v2 = vpop.f32.mrf.mxu1 }
 0x1e1   : > { %3000 = vst.msk [vmem:[%s3604_s28 + $0x50] sm:$0xff] %vm482_vm5, %v4079_v0  ;;  %v1993_v61 = vmul.f32 %v4079_v0, %v4079_v0  ;;  %v1856_v2 = vadd.f32 %v1855_v57, %v4072_v29 }
 0x1e2   : > { %v1986_v3 = vpop.f32.mrf.mxu0  ;;  %v2149_v4 = vpop.f32.mrf.mxu1 }
 0x1e3   : > { %v1992_v3 = vadd.f32 %v4079_v0, %v1854_v60 }
 0x1e4   : > { %v3334_v42 = vpop.f32.mrf.mxu0  ;;  %v3352_v5 = vpop.f32.mrf.mxu1 }
 0x1e6   : > { %v2097_v6 = vpop.f32.mrf.mxu0  ;;  %v2240_v8 = vpop.f32.mrf.mxu1 }
 0x1e7   : > { %v2098_v9 = vadd.f32 %v2097_v6, %v2052_v55  ;;  %v1994_v6 = vadd.f32 %v1993_v61, %v1856_v2 }
 0x1e8   : > { %v3345_v10 = vpop.f32.mrf.mxu0  ;;  %v3363_v11 = vpop.f32.mrf.mxu1 }
 0x1e9   : > { %v2152_v12 = vadd.f32 %v2146_v63, %v2098_v9 }
 0x1ea   : > { %v2100_v13 = vpop.f32.mrf.mxu0  ;;  %v2243_v14 = vpop.f32.mrf.mxu1 }
 0x1eb   : > { %3007 = vst.msk [vmem:[%s3604_s28 + $0x58] sm:$0xff] %vm482_vm5, %v2152_v12  ;;  %v2156_v4 = vmul.f32 %v2152_v12, %v2152_v12 }
 0x1ec   : > { %v3346_v15 = vpop.f32.mrf.mxu0  ;;  %v3364_v16 = vpop.f32.mrf.mxu1 }
 0x1ed   : > { %v2157_v10 = vadd.f32 %v2156_v4, %v1994_v6 }
 0x1ee   : > { %v2197_v17 = vpop.f32.mrf.mxu0  ;;  %v2353_v18 = vpop.f32.mrf.mxu1 }
 0x1ef   : > { %v2241_v24 = vadd.f32 %v2240_v8, %v2197_v17  ;;  %v2155_v8 = vadd.f32 %v2152_v12, %v1992_v3 }
 0x1f0   : > { %v3357_v19 = vpop.f32.mrf.mxu0  ;;  %v3375_v45 = vpop.f32.mrf.mxu1 }
 0x1f1   : > { %v2760_v45 = vld [vmem:[%s3594_s9] sm:$0xff] }
 0x1f2   : > { %v2200_v20 = vpop.f32.mrf.mxu0  ;;  %v2356_v21 = vpop.f32.mrf.mxu1 }
 0x1f4   : > { %v3358_v22 = vpop.f32.mrf.mxu0  ;;  %v3376_v23 = vpop.f32.mrf.mxu1 }
 0x1f6   : > { %v2284_v7 = vpop.f32.mrf.mxu0  ;;  %v2447_v25 = vpop.f32.mrf.mxu1 }
 0x1f7   : > { %v2290_v26 = vadd.f32 %v2284_v7, %v2241_v24  ;;  %v3034_v24 = vld [vmem:[%s3594_s9 + $0x8] sm:$0xff] }
 0x1f8   : > { %v3369_v27 = vpop.f32.mrf.mxu0  ;;  %v3387_v28 = vpop.f32.mrf.mxu1 }
 0x1f9   : > { %3013 = vst.msk [vmem:[%s3604_s28 + $0x60] sm:$0xff] %vm482_vm5, %v2290_v26  ;;  %v2294_v9 = vmul.f32 %v2290_v26, %v2290_v26  ;;  %v2293_v11 = vadd.f32 %v2290_v26, %v2155_v8 }
 0x1fa   : > { %v2287_v30 = vpop.f32.mrf.mxu0  ;;  %v2450_v31 = vpop.f32.mrf.mxu1 }
 0x1fb   : > { %v2295_v29 = vadd.f32 %v2294_v9, %v2157_v10 }
 0x1fc   : > { %v3370_v32 = vpop.f32.mrf.mxu0  ;;  %v3388_v33 = vpop.f32.mrf.mxu1 }
 0x1fe   : > { %v2398_v34 = vpop.f32.mrf.mxu0  ;;  %v2541_v36 = vpop.f32.mrf.mxu1 }
 0x1ff   : > { %v2399_v38 = vadd.f32 %v2398_v34, %v2353_v18 }
 0x200   : > { %v3381_v39 = vpop.f32.mrf.mxu0  ;;  %v3399_v41 = vpop.f32.mrf.mxu1 }
 0x201   : > { %v2453_v43 = vadd.f32 %v2447_v25, %v2399_v38 }
 0x202   : > { %v2401_v44 = vpop.f32.mrf.mxu0  ;;  %v2544_v46 = vpop.f32.mrf.mxu1 }
 0x203   : > { %3020 = vst.msk [vmem:[%s3604_s28 + $0x68] sm:$0xff] %vm482_vm5, %v2453_v43  ;;  %v2457_v13 = vmul.f32 %v2453_v43, %v2453_v43  ;;  %v2456_v15 = vadd.f32 %v2453_v43, %v2293_v11 }
 0x204   : > { %v3382_v47 = vpop.f32.mrf.mxu0  ;;  %v3400_v48 = vpop.f32.mrf.mxu1 }
 0x205   : > { %v2458_v18 = vadd.f32 %v2457_v13, %v2295_v29 }
 0x206   : > { %v2498_v37 = vpop.f32.mrf.mxu0  ;;  %v2654_v50 = vpop.f32.mrf.mxu1 }
 0x207   : > { %v2542_v58 = vadd.f32 %v2541_v36, %v2498_v37 }
 0x208   : > { %v3393_v51 = vpop.f32.mrf.mxu0  ;;  %v3411_v52 = vpop.f32.mrf.mxu1 }
 0x20a   : > { %v2501_v53 = vpop.f32.mrf.mxu0  ;;  %v2657_v54 = vpop.f32.mrf.mxu1 }
 0x20c   : > { %v3394_v55 = vpop.f32.mrf.mxu0  ;;  %v3412_v56 = vpop.f32.mrf.mxu1 }
 0x20e   : > { %v2585_v40 = vpop.f32.mrf.mxu0  ;;  %v2748_v59 = vpop.f32.mrf.mxu1 }
 0x20f   : > { %v2591_v62 = vadd.f32 %v2585_v40, %v2542_v58 }
 0x210   : > { %v3405_v63 = vpop.f32.mrf.mxu0  ;;  %v3423_v1 = vpop.f32.mrf.mxu1 }
 0x211   : > { %3026 = vst.msk [vmem:[%s3604_s28 + $0x70] sm:$0xff] %vm482_vm5, %v2591_v62  ;;  %v2595_v0 = vmul.f32 %v2591_v62, %v2591_v62  ;;  %v2594_v19 = vadd.f32 %v2591_v62, %v2456_v15 }
 0x212   : > { %v2588_v42 = vpop.f32.mrf.mxu0  ;;  %v2751_v5 = vpop.f32.mrf.mxu1 }
 0x213   : > { %v2596_v21 = vadd.f32 %v2595_v0, %v2458_v18 }
 0x214   : > { %v3406_v35 = vpop.f32.mrf.mxu0  ;;  %v3424_v49 = vpop.f32.mrf.mxu1 }
 0x216   : > { %v2699_v14 = vpop.f32.mrf.mxu0 }
 0x217   : > { %v2700_v16 = vadd.f32 %v2699_v14, %v2654_v50 }
 0x218   : > { %v3417_v17 = vpop.f32.mrf.mxu0 }
 0x219   : > { %v2754_v12 = vadd.f32 %v2748_v59, %v2700_v16 }
 0x21a   : > { %v2702_v20 = vpop.f32.mrf.mxu0 }
 0x21b   : > { %3033 = vst.msk [vmem:[%s3604_s28 + $0x78] sm:$0xff] %vm482_vm5, %v2754_v12  ;;  %v2757_v22 = vadd.f32 %v2754_v12, %v2594_v19  ;;  %v2758_v23 = vmul.f32 %v2754_v12, %v2754_v12 }
 0x21c   : > { %v3418_v7 = vpop.f32.mrf.mxu0 }
 0x21d   : > { %v2759_v25 = vadd.f32 %v2758_v23, %v2596_v21  ;;  %v2761_v26 = vadd.f32 %v2760_v45, %v2757_v22 }
 0x21f   : > { %2762 = vst.msk [vmem:[%s3594_s9] sm:$0xff] %vm482_vm5, %v2761_v26  ;;  %v2765_v27 = vadd.f32 %v3034_v24, %v2759_v25 }
 0x221   : > { %3035 = vst.msk [vmem:[%s3594_s9 + $0x8] sm:$0xff] %vm482_vm5, %v2765_v27 }
 0x222 PF: > { %s15_s19 = sadd.s32 1, %s3519_s19   ;;  %s4128_s15 = smov %s3511_s17 }
 0x223   : > { %p12_p10 = scmp.ge.s32.totalorder %s15_s19, 6   ;;  %s4129_s16 = smov %s3515_s18 }
 0x224   : > { %s4130_s17 = smov %s4133_s20  ;;  %s4131_s18 = smov %s4137_s21 }
 0x225   :  { %14 = sbr.rel (!%p12_p10) target bundleno = 3 (0x3), region = 110 }

</bundles_post_ra>
